<compile_context>
chip_gen: v7x
topology: tpu7x:2x2x1
jax: 0.10.0
libtpu: 0.0.40
codegen_flags: <defaults>
</compile_context>

<pallas_src>
import jax
import jax.numpy as jnp
from jax.experimental import pallas as pl
from jax.experimental.pallas import tpu as pltpu


def relu_conv1x1_kernel(w_ref, x_ref, o_ref):
    # w_ref: (TCO, Cin)      -- one tile of the 1x1 conv weight
    # x_ref: (1, Cin, HW)    -- one image's activations (NCHW-native view),
    #                           resident across the Cout-tile grid axis
    # o_ref: (1, TCO, HW)
    x = jnp.maximum(x_ref[0], 0.0)                       # fused ReLU, (Cin, HW)
    o_ref[0] = jnp.dot(
        w_ref[...], x, preferred_element_type=jnp.float32
    ).astype(o_ref.dtype)                                # (TCO, HW) via MXU


def relu_conv1x1(x_nchw: jax.Array, weight_oi: jax.Array) -> jax.Array:
    """x_nchw: (N, Cin, H, W) float32; weight_oi: (Cout, Cin) float32 (1x1 conv)."""
    N, Cin, H, W = x_nchw.shape
    Cout = weight_oi.shape[0]
    HW = H * W

    # Output-channel tile: 256 gives 4 pipelined/parallel steps for Cout=1024.
    TCO = 256 if Cout % 256 == 0 else Cout
    n_co_tiles = Cout // TCO

    # NCHW-native 2-D view per image: (N, Cin, H*W). Pure reshape, no transpose.
    x3d = x_nchw.reshape(N, Cin, HW)

    itemsize = jnp.dtype(x_nchw.dtype).itemsize
    flops = 2 * N * HW * Cin * Cout
    bytes_accessed = (x3d.size + weight_oi.size + N * Cout * HW) * itemsize

    out3d = pl.pallas_call(
        relu_conv1x1_kernel,
        out_shape=jax.ShapeDtypeStruct((N, Cout, HW), x_nchw.dtype),
        grid=(N, n_co_tiles),  # j (Cout tiles) innermost -> weight/out pipelined
        in_specs=[
            # Weight tile changes every j step -> double-buffered DMA overlaps MXU.
            pl.BlockSpec((TCO, Cin), lambda n, j: (j, 0)),
            # Activations: constant block index across j -> fetched once per image.
            pl.BlockSpec((1, Cin, HW), lambda n, j: (n, 0, 0)),
        ],
        out_specs=pl.BlockSpec((1, TCO, HW), lambda n, j: (n, j, 0)),
        compiler_params=pltpu.CompilerParams(
            # Both axes independent: enables dual-TC sharding on v7x.
            dimension_semantics=("parallel", "parallel"),
        ),
        cost_estimate=pl.CostEstimate(
            flops=flops, transcendentals=0, bytes_accessed=bytes_accessed
        ),
    )(weight_oi, x3d)

    # (N, Cout, H*W) -> (N, Cout, H, W): contiguous reshape, no transpose.
    return out3d.reshape(N, Cout, H, W)


if __name__ == "__main__":
    key = jax.random.PRNGKey(0)
    k_x, k_w = jax.random.split(key)

    # Shapes implied by the module: input (1, 256, 28, 28), conv 256 -> 1024, 1x1.
    N, Cin, H, W = 1, 256, 28, 28
    Cout = 1024

    x267 = jax.random.normal(k_x, (N, Cin, H, W), dtype=jnp.float32)
    # Deterministic, kaiming-ish scale init for the 1x1 conv weight (Cout, Cin).
    weight = jax.random.normal(k_w, (Cout, Cin), dtype=jnp.float32) * (2.0 / Cin) ** 0.5

    out = relu_conv1x1(x267, weight)
    out = jax.block_until_ready(out)

    # Reference check (plain JAX): relu then 1x1 conv as matmul.
    x_ref = jnp.maximum(x267, 0.0)
    ref = jnp.einsum("nchw,oc->nohw", x_ref, weight)
    assert out.shape == (N, Cout, H, W)
    assert jnp.allclose(out, ref, atol=1e-4, rtol=1e-4)

    print("KERNEL_OK")
</pallas_src>

<mosaic_0001>
module attributes {stable_mosaic.version = 11 : i64} {
  func.func @relu_conv1x1_kernel(%arg0: i32, %arg1: i32, %arg2: memref<256x256xf32, #tpu.memory_space<vmem>>, %arg3: memref<1x256x784xf32, #tpu.memory_space<vmem>>, %arg4: memref<1x256x784xf32, #tpu.memory_space<vmem>>) attributes {dimension_semantics = [#tpu.dimension_semantics<parallel>, #tpu.dimension_semantics<parallel>], iteration_bounds = array<i64: 1, 4>, scalar_prefetch = 0 : i64, scratch_operands = 0 : i64, tpu.core_type = #tpu.core_type<tc>, window_params = [{transform_indices = @transform_0, window_bounds = array<i64: 256, 256>}, {transform_indices = @transform_1, window_bounds = array<i64: 1, 256, 784>}, {transform_indices = @transform_2, window_bounds = array<i64: 1, 256, 784>}]} {
    %c0 = arith.constant 0 : index
    %c0_0 = arith.constant 0 : index
    %c0_1 = arith.constant 0 : index
    %0 = vector.load %arg3[%c0, %c0_0, %c0_1] : memref<1x256x784xf32, #tpu.memory_space<vmem>>, vector<1x256x784xf32>
    %1 = vector.shape_cast %0 : vector<1x256x784xf32> to vector<256x784xf32>
    %cst = arith.constant 0.000000e+00 : f32
    %2 = vector.broadcast %cst : f32 to vector<256x784xf32>
    %3 = arith.maximumf %1, %2 : vector<256x784xf32>
    %c0_2 = arith.constant 0 : index
    %c0_3 = arith.constant 0 : index
    %4 = vector.load %arg2[%c0_2, %c0_3] : memref<256x256xf32, #tpu.memory_space<vmem>>, vector<256x256xf32>
    %cst_4 = arith.constant dense<0.000000e+00> : vector<256x784xf32>
    %5 = tpu.matmul %4, %3, %cst_4 {dimension_numbers = #tpu.dot_dimension_numbers<[1], [0], [0], [1], [0, 0, 1, 1], [], []>} : vector<256x256xf32>, vector<256x784xf32>, vector<256x784xf32> -> vector<256x784xf32>
    %c0_5 = arith.constant 0 : index
    %c0_6 = arith.constant 0 : index
    %c0_7 = arith.constant 0 : index
    %6 = vector.load %arg4[%c0_5, %c0_6, %c0_7] : memref<1x256x784xf32, #tpu.memory_space<vmem>>, vector<1x256x784xf32>
    %7 = vector.shape_cast %6 : vector<1x256x784xf32> to vector<256x784xf32>
    %8 = vector.shape_cast %5 : vector<256x784xf32> to vector<1x256x784xf32>
    tpu.vector_store %arg4[%c0_5, %c0_6, %c0_7], %8 {strides = array<i32>} : memref<1x256x784xf32, #tpu.memory_space<vmem>>, vector<1x256x784xf32>,
    return
  }
  func.func @transform_0(%arg0: i32, %arg1: i32) -> (i32, i32) {
    %c0_i32 = arith.constant 0 : i32
    %c0_i32_0 = arith.constant 0 : i32
    return %arg1, %c0_i32 : i32, i32
  }
  func.func @transform_1(%arg0: i32, %arg1: i32) -> (i32, i32, i32) {
    %c0_i32 = arith.constant 0 : i32
    %c0_i32_0 = arith.constant 0 : i32
    %c0_i32_1 = arith.constant 0 : i32
    return %arg0, %c0_i32, %c0_i32_0 : i32, i32, i32
  }
  func.func @transform_2(%arg0: i32, %arg1: i32) -> (i32, i32, i32) {
    %c0_i32 = arith.constant 0 : i32
    %c0_i32_0 = arith.constant 0 : i32
    return %arg0, %arg1, %c0_i32 : i32, i32, i32
  }
}

</mosaic_0001>

<bundles_post_ra>
// kernel: tpu_custom_call.1
= control target key start
LH: loop header
LB: loop body
LE: loop exit
PB: predicated region body
PF: predicated region fallthrough
CT: control target
= control target key end

     0   :  { %7 = vsyncpa [#allocation3], 0  ;;  %s3989_s0 = inlined_call_operand.hbm [shape: f32[1024,256], index: 0, kind: input, shape index: {}]   ;;  %s3990_s1 = inlined_call_operand.vmem [shape: f32[1,256,784], index: 1, kind: input, shape index: {}]   ;;  %s3991_s2 = inlined_call_operand.vmem [shape: f32[1,1024,784], index: 2, kind: output, shape index: {}]  }
   0x1   :  { %9 = vsyncpa [#allocation3 + $0x1], 0  ;;  %s2475_s9 = smov 0   ;;  %s2477_s10 = smov 0  }
   0x2   :  { %s2479_s11 = smov 0   ;;  %s2481_s12 = smov 0  }
   0x3   :  { %s2483_s13 = smov 0   ;;  %s2485_s14 = smov 0  }
   0x4 LB: > { %s2057_s15 = sadd.s32 4294967295, %s2454_s14   ;;  %s24_s16 = sadd.s32 1, %s2450_s13  ;;  %s2454_s14 = sphi %s2485_s14, %s15_s14   ;;  %s2450_s13 = sphi %s2483_s13, %s3999_s13   ;;  %s2446_s12 = sphi %s2481_s12, %s3998_s12   ;;  %s2442_s11 = sphi %s2479_s11, %s3997_s11   ;;  %s2438_s10 = sphi %s2477_s10, %s3996_s10   ;;  %s2434_s9 = sphi %s2475_s9, %s3995_s9  }
   0x5   : > { %p25_p0 = scmp.ge.s32.totalorder %s24_s16, 4  ;;  %s34_s17 = sadd.s32 1, %s2442_s11 }
   0x6   : > { %p41_p1 = scmp.ne.s32.totalorder %s2442_s11, %s2438_s10  ;;  %p42_p2 = scmp.eq.s32.totalorder %s2454_s14, 0 }
   0x7   : > { %s4001_s16 = smov (%p25_p0, %s24_s16), 0  ;;  %p47_p4 = scmp.ne.s32.totalorder %s2438_s10, %s2434_s9 }
   0x8   : > { %p2511_p3 = por %p42_p2, %p41_p1  ;;  %s31_s19 = ssub.s32 %s2450_s13, %s4001_s16 }
   0x9   : > { %p48_p5 = scmp.eq.s32.totalorder %s2057_s15, 0  ;;  %p32_p6 = scmp.eq.s32.totalorder %s31_s19, 0 }
   0xa   : > { %p2321_p8 = scmp.lt.s32.totalorder %s2454_s14, 4  ;;  %s133_s22 = sand.u32 1, %s2442_s11  }
   0xb   : > { %p2518_p7 = por %p48_p5, %p47_p4  ;;  %s2073_s23 = sshll.u32 %s2450_s13, 13 }
   0xc   : > { %s2524_s21 = scalar_select %p32_p6, %s2442_s11, %s34_s17  }
   0xd   : > { %s2062_s24 = sshll.u32 %s133_s22, 9  ;;  %s2531_s27 = scalar_lea.hbm %s3989_s0, %s2073_s23 }
   0xe   : > { %s137_s28 = scalar_lea.vmem [#allocation2], %s2062_s24  ;;  %p2535_p9 = pnand %p2321_p8, %p2511_p3 }
   0xf   : > { %s145_s29 = sshll.u32 %s137_s28, 4  ;;  %s2541_s3 = scalar_lea.sflag [#allocation3], %s133_s22  ;;  %s2539_s29 = int_to_ptr.vmem [resolvable:$true] %s145_s29 }
  0x10   : > { %s2374_s4 = scalar_lea.hbm %s2531_s27, 8192  ;;  %p2376_p11 = pneg %p2535_p9 }
  0x11   : > { %p2375_p10 = scmp.ne.s32.totalorder %s2531_s27, %s2374_s4  ;;  %s2379_s7 = scalar_lea.hbm %s3989_s0, 32768 }
  0x12   : > { %p2380_p0 = scmp.lt.u32.totalorder %s2531_s27, %s3989_s0  ;;  %p2381_p1 = scmp.lt.u32.totalorder %s2379_s7, %s2374_s4 }
  0x13   : > { %p2377_p12 = pnand %p2376_p11, %p2375_p10  ;;  %p2383_p3 = scmp.lt.u32.totalorder %s2374_s4, %s2531_s27 }
  0x14   : > { %p2382_p2 = por %p2381_p1, %p2380_p0 }
  0x15   : > { %p2378_p13 = pneg %p2377_p12 }
  0x16   : > { %p2384_p4 = por %p2383_p3, %p2382_p2 }
  0x18   : > { %p2385_p5 = pnand %p2384_p4, %p2378_p13 }
  0x1a   : > { %2388 = shalt.err (!%p2385_p5)
}
  0x1b   : > { %s2389_s15 = scalar_lea.vmem %s2539_s29, 8192  ;;  %s2456_s17 = smov [#allocation2]  }
  0x1c   : > { %p2390_p6 = scmp.ne.s32.totalorder %s2539_s29, %s2389_s15  ;;  %s2394_s18 = sshll.u32 %s2456_s17, 4  ;;  %s2395_s18 = int_to_ptr.vmem [resolvable:$false] %s2394_s18 }
  0x1d   : > { %s2396_s19 = scalar_lea.vmem %s2395_s18, 16384  ;;  %p2397_p12 = scmp.lt.s32.totalorder %s2539_s29, %s2395_s18 }
  0x1e   : > { %p2392_p8 = pnand %p2390_p6, %p2376_p11  ;;  %p2398_p0 = scmp.lt.s32.totalorder %s2396_s19, %s2389_s15 }
  0x20   : > { %p2393_p10 = pneg %p2392_p8  ;;  %p2399_p1 = por %p2398_p0, %p2397_p12 }
  0x22   : > { %p2400_p2 = pnand %p2399_p1, %p2393_p10 }
  0x24   : > { %2403 = shalt.err (!%p2400_p2)
}
  0x25   : > { %s2457_s22 = smov 256   ;;  %s2458_s23 = smov 16  }
  0x26   : > { %2320 = dma.hbm_to_vmem [thread:$0]  (!%p2535_p9), %s2531_s27, 8192, %s2539_s29, %s2541_s3, %s2457_s22, %s2457_s22, %s2458_s23  }
  0x27   : > { %p2066_p11 = scmp.ge.s32.totalorder %s2454_s14, 1  ;;  %p153_p13 = scmp.lt.s32.totalorder %s2454_s14, 5 }
  0x29   : > { %p154_p3 = pnand %p2066_p11, %p153_p13 }
  0x2a   : > { %s159_s24 = sand.u32 (!%p154_p3), 1, %s2438_s10  }
  0x2b   : > { %157 = sbr.rel (%p154_p3) target bundleno = 587 (0x24b), region = 28  ;;  %s2067_s25 = sshll.u32 (!%p154_p3), %s159_s24, 9 }
  0x2c   : > { %s160_s26 = scalar_lea.sflag (!%p154_p3), [#allocation3], %s159_s24  ;;  %s2572_s28 = scalar_lea.vmem (!%p154_p3), [#allocation2], %s2067_s25 }
  0x32   : > { %2429 = dma.done.wait (%p2518_p7), %s160_s26, 8192  }
  0x33   : > { %2431 = vsyncadd (%p2518_p7), %s160_s26, 4294959104  ;;  %v212_v0 = vld [vmem:[%s3990_s1 + $0x8] sm:$0xff]  ;;  %v219_v1 = vld [vmem:[%s3990_s1 + $0x40] sm:$0xff]  ;;  %vm1725_vm0 = vcmask 130048  }
  0x34   : > { %v211_v2 = vld [vmem:[%s3990_s1] sm:$0xff]  ;;  %v436_v3 = vmax.f32 %v212_v0, 0.0  ;;  %v443_v4 = vmax.f32 %v219_v1, 0.0  ;;  %v218_v5 = vld [vmem:[%s3990_s1 + $0x38] sm:$0xff]  ;;  %v221_v8 = vld [vmem:[%s3990_s1 + $0x50] sm:$0xff] }
  0x35   : > { %v435_v6 = vmax.f32 %v211_v2, 0.0  ;;  %v214_v7 = vld [vmem:[%s3990_s1 + $0x18] sm:$0xff]  ;;  %v442_v9 = vmax.f32 %v218_v5, 0.0  ;;  %v445_v11 = vmax.f32 %v221_v8, 0.0  ;;  %v213_v12 = vld [vmem:[%s3990_s1 + $0x10] sm:$0xff]  ;;  %v220_v13 = vld [vmem:[%s3990_s1 + $0x48] sm:$0xff] }
  0x36   : > { %v438_v10 = vmax.f32 %v214_v7, 0.0  ;;  %v226_v14 = vld [vmem:[%s3990_s1 + $0x78] sm:$0xff]  ;;  %v2074_v15 = vpack.c.bf16 %v443_v4, %v436_v3  ;;  %v437_v16 = vmax.f32 %v213_v12, 0.0  ;;  %v444_v17 = vmax.f32 %v220_v13, 0.0  ;;  %v233_v18 = vld [vmem:[%s3990_s1 + $0xb0] sm:$0xff]  ;;  %v232_v21 = vld [vmem:[%s3990_s1 + $0xa8] sm:$0xff] }
  0x37   : > { %v450_v19 = vmax.f32 %v226_v14, 0.0  ;;  %v225_v20 = vld [vmem:[%s3990_s1 + $0x70] sm:$0xff]  ;;  %v2076_v22 = vpack.c.bf16 %v442_v9, %v435_v6  ;;  %v457_v24 = vmax.f32 %v233_v18, 0.0  ;;  %v228_v26 = vld [vmem:[%s3990_s1 + $0x88] sm:$0xff]  ;;  %v235_v27 = vld [vmem:[%s3990_s1 + $0xc0] sm:$0xff]  ;;  %v456_v30 = vmax.f32 %v232_v21, 0.0 }
  0x38   : > { %v2138_v23 = vpack.c.bf16 %v445_v11, %v438_v10  ;;  %v449_v25 = vmax.f32 %v225_v20, 0.0  ;;  %v227_v28 = vld [vmem:[%s3990_s1 + $0x80] sm:$0xff]  ;;  %2075 = vmatprep.subr.bf16.mxu0 %v2074_v15  ;;  %v2140_v29 = vpack.c.bf16 %v444_v17, %v437_v16  ;;  %v452_v31 = vmax.f32 %v228_v26, 0.0  ;;  %v234_v33 = vld [vmem:[%s3990_s1 + $0xb8] sm:$0xff]  ;;  %v240_v34 = vld [vmem:[%s3990_s1 + $0xe8] sm:$0xff] }
  0x39   : > { %v459_v32 = vmax.f32 %v235_v27, 0.0  ;;  %v247_v35 = vld [vmem:[%s3990_s1 + $0x120] sm:$0xff]  ;;  %2077 = vmatpush1.bf16.msra.mxu0 %v2076_v22  ;;  %v2078_v36 = vpack.c.bf16 %v457_v24, %v450_v19  ;;  %v451_v37 = vmax.f32 %v227_v28, 0.0  ;;  %v458_v38 = vmax.f32 %v234_v33, 0.0  ;;  %v246_v41 = vld [vmem:[%s3990_s1 + $0x118] sm:$0xff]  ;;  %v249_v47 = vld [vmem:[%s3990_s1 + $0x130] sm:$0xff] }
  0x3a   : > { %2139 = vmatprep.subr.bf16.mxu1 %v2138_v23  ;;  %v464_v39 = vmax.f32 %v240_v34, 0.0  ;;  %v239_v40 = vld [vmem:[%s3990_s1 + $0xe0] sm:$0xff]  ;;  %v242_v42 = vld [vmem:[%s3990_s1 + $0xf8] sm:$0xff]  ;;  %v2080_v43 = vpack.c.bf16 %v456_v30, %v449_v25  ;;  %v471_v45 = vmax.f32 %v247_v35, 0.0  ;;  %v241_v48 = vld [vmem:[%s3990_s1 + $0xf0] sm:$0xff]  ;;  %v470_v51 = vmax.f32 %v246_v41, 0.0 }
  0x3b   : > { %2141 = vmatpush1.bf16.msra.mxu1 %v2140_v29  ;;  %v2142_v44 = vpack.c.bf16 %v459_v32, %v452_v31  ;;  %v463_v46 = vmax.f32 %v239_v40, 0.0  ;;  %v248_v49 = vld [vmem:[%s3990_s1 + $0x128] sm:$0xff]  ;;  %2079 = vmatprep.subr.bf16.mxu0 %v2078_v36  ;;  %v2144_v50 = vpack.c.bf16 %v458_v38, %v451_v37  ;;  %v466_v52 = vmax.f32 %v242_v42, 0.0  ;;  %v254_v54 = vld [vmem:[%s3990_s1 + $0x158] sm:$0xff]  ;;  %v261_v55 = vld [vmem:[%s3990_s1 + $0x190] sm:$0xff] }
  0x3c   : > { %v473_v53 = vmax.f32 %v249_v47, 0.0  ;;  %v253_v56 = vld [vmem:[%s3990_s1 + $0x150] sm:$0xff]  ;;  %v2082_v57 = vpack.c.bf16 %v471_v45, %v464_v39  ;;  %v465_v58 = vmax.f32 %v241_v48, 0.0  ;;  %v472_v59 = vmax.f32 %v248_v49, 0.0  ;;  %v260_v61 = vld [vmem:[%s3990_s1 + $0x188] sm:$0xff]  ;;  %v263_v63 = vld [vmem:[%s3990_s1 + $0x1a0] sm:$0xff] }
  0x3d   : > { %2143 = vmatprep.subr.bf16.mxu1 %v2142_v44  ;;  %v478_v60 = vmax.f32 %v254_v54, 0.0  ;;  %v256_v62 = vld [vmem:[%s3990_s1 + $0x168] sm:$0xff]  ;;  %2081 = vmatpush1.bf16.msra.mxu0 %v2080_v43  ;;  %v2084_v0 = vpack.c.bf16 %v470_v51, %v463_v46  ;;  %v485_v2 = vmax.f32 %v261_v55, 0.0  ;;  %v477_v3 = vmax.f32 %v253_v56, 0.0  ;;  %v255_v4 = vld [vmem:[%s3990_s1 + $0x160] sm:$0xff]  ;;  %v262_v5 = vld [vmem:[%s3990_s1 + $0x198] sm:$0xff] }
  0x3e   : > { %v2146_v1 = vpack.c.bf16 %v473_v53, %v466_v52  ;;  %v268_v6 = vld [vmem:[%s3990_s1 + $0x1c8] sm:$0xff]  ;;  %2083 = vmatprep.subr.bf16.mxu0 %v2082_v57  ;;  %v2148_v7 = vpack.c.bf16 %v472_v59, %v465_v58  ;;  %v484_v8 = vmax.f32 %v260_v61, 0.0  ;;  %v480_v9 = vmax.f32 %v256_v62, 0.0  ;;  %v275_v11 = vld [vmem:[%s3990_s1 + $0x200] sm:$0xff]  ;;  %v274_v13 = vld [vmem:[%s3990_s1 + $0x1f8] sm:$0xff] }
  0x3f   : > { %2145 = vmatpush1.bf16.msra.mxu1 %v2144_v50  ;;  %v487_v10 = vmax.f32 %v263_v63, 0.0  ;;  %v267_v12 = vld [vmem:[%s3990_s1 + $0x1c0] sm:$0xff]  ;;  %v2086_v14 = vpack.c.bf16 %v485_v2, %v478_v60  ;;  %v479_v15 = vmax.f32 %v255_v4, 0.0  ;;  %v486_v16 = vmax.f32 %v262_v5, 0.0  ;;  %v270_v18 = vld [vmem:[%s3990_s1 + $0x1d8] sm:$0xff]  ;;  %v277_v19 = vld [vmem:[%s3990_s1 + $0x210] sm:$0xff] }
  0x40   : > { %2147 = vmatprep.subr.bf16.mxu1 %v2146_v1  ;;  %v492_v17 = vmax.f32 %v268_v6, 0.0  ;;  %v269_v20 = vld [vmem:[%s3990_s1 + $0x1d0] sm:$0xff]  ;;  %v2088_v21 = vpack.c.bf16 %v484_v8, %v477_v3  ;;  %v499_v23 = vmax.f32 %v275_v11, 0.0  ;;  %v491_v24 = vmax.f32 %v267_v12, 0.0  ;;  %v276_v25 = vld [vmem:[%s3990_s1 + $0x208] sm:$0xff]  ;;  %v282_v26 = vld [vmem:[%s3990_s1 + $0x238] sm:$0xff] }
  0x41   : > { %v2150_v22 = vpack.c.bf16 %v487_v10, %v480_v9  ;;  %v289_v27 = vld [vmem:[%s3990_s1 + $0x270] sm:$0xff]  ;;  %2085 = vmatpush1.bf16.msra.mxu0 %v2084_v0  ;;  %v2152_v28 = vpack.c.bf16 %v486_v16, %v479_v15  ;;  %v498_v29 = vmax.f32 %v274_v13, 0.0  ;;  %v494_v30 = vmax.f32 %v270_v18, 0.0  ;;  %v288_v33 = vld [vmem:[%s3990_s1 + $0x268] sm:$0xff]  ;;  %v291_v39 = vld [vmem:[%s3990_s1 + $0x280] sm:$0xff] }
  0x42   : > { %v501_v31 = vmax.f32 %v277_v19, 0.0  ;;  %v281_v32 = vld [vmem:[%s3990_s1 + $0x230] sm:$0xff]  ;;  %v284_v34 = vld [vmem:[%s3990_s1 + $0x248] sm:$0xff]  ;;  %2087 = vmatprep.subr.bf16.mxu0 %v2086_v14  ;;  %v2090_v35 = vpack.c.bf16 %v499_v23, %v492_v17  ;;  %v493_v36 = vmax.f32 %v269_v20, 0.0  ;;  %v500_v37 = vmax.f32 %v276_v25, 0.0  ;;  %v283_v40 = vld [vmem:[%s3990_s1 + $0x240] sm:$0xff] }
  0x43   : > { %2149 = vmatpush1.bf16.msra.mxu1 %v2148_v7  ;;  %v506_v38 = vmax.f32 %v282_v26, 0.0  ;;  %v513_v42 = vmax.f32 %v289_v27, 0.0  ;;  %v290_v43 = vld [vmem:[%s3990_s1 + $0x278] sm:$0xff]  ;;  %v296_v44 = vld [vmem:[%s3990_s1 + $0x2a8] sm:$0xff]  ;;  %v303_v45 = vld [vmem:[%s3990_s1 + $0x2e0] sm:$0xff]  ;;  %v505_v46 = vmax.f32 %v281_v32, 0.0  ;;  %v2092_v52 = vpack.c.bf16 %v498_v29, %v491_v24 }
  0x44   : > { %2151 = vmatprep.subr.bf16.mxu1 %v2150_v22  ;;  %v2154_v41 = vpack.c.bf16 %v501_v31, %v494_v30  ;;  %v512_v47 = vmax.f32 %v288_v33, 0.0  ;;  %v508_v48 = vmax.f32 %v284_v34, 0.0  ;;  %v515_v49 = vmax.f32 %v291_v39, 0.0  ;;  %v298_v50 = vld [vmem:[%s3990_s1 + $0x2b8] sm:$0xff]  ;;  %v305_v51 = vld [vmem:[%s3990_s1 + $0x2f0] sm:$0xff]  ;;  %v295_v55 = vld [vmem:[%s3990_s1 + $0x2a0] sm:$0xff] }
  0x45   : > { %2089 = vmatpush1.bf16.msra.mxu0 %v2088_v21  ;;  %v2156_v53 = vpack.c.bf16 %v500_v37, %v493_v36  ;;  %v507_v54 = vmax.f32 %v283_v40, 0.0  ;;  %v302_v56 = vld [vmem:[%s3990_s1 + $0x2d8] sm:$0xff]  ;;  %v297_v57 = vld [vmem:[%s3990_s1 + $0x2b0] sm:$0xff]  ;;  %v2094_v58 = vpack.c.bf16 %v513_v42, %v506_v38  ;;  %v514_v59 = vmax.f32 %v290_v43, 0.0  ;;  %v304_v62 = vld [vmem:[%s3990_s1 + $0x2e8] sm:$0xff] }
  0x46   : > { %2091 = vmatprep.subr.bf16.mxu0 %v2090_v35  ;;  %v520_v60 = vmax.f32 %v296_v44, 0.0  ;;  %v527_v61 = vmax.f32 %v303_v45, 0.0  ;;  %v310_v63 = vld [vmem:[%s3990_s1 + $0x318] sm:$0xff]  ;;  %v317_v0 = vld [vmem:[%s3990_s1 + $0x350] sm:$0xff]  ;;  %v2158_v1 = vpack.c.bf16 %v515_v49, %v508_v48  ;;  %v522_v2 = vmax.f32 %v298_v50, 0.0  ;;  %v312_v7 = vld [vmem:[%s3990_s1 + $0x328] sm:$0xff] }
  0x47   : > { %2153 = vmatpush1.bf16.msra.mxu1 %v2152_v28  ;;  %v529_v3 = vmax.f32 %v305_v51, 0.0  ;;  %v2096_v4 = vpack.c.bf16 %v512_v47, %v505_v46  ;;  %v519_v5 = vmax.f32 %v295_v55, 0.0  ;;  %v526_v6 = vmax.f32 %v302_v56, 0.0  ;;  %v319_v8 = vld [vmem:[%s3990_s1 + $0x360] sm:$0xff]  ;;  %v309_v13 = vld [vmem:[%s3990_s1 + $0x310] sm:$0xff]  ;;  %v316_v14 = vld [vmem:[%s3990_s1 + $0x348] sm:$0xff] }
  0x48   : > { %2155 = vmatprep.subr.bf16.mxu1 %v2154_v41  ;;  %v521_v9 = vmax.f32 %v297_v57, 0.0  ;;  %v528_v10 = vmax.f32 %v304_v62, 0.0  ;;  %v534_v11 = vmax.f32 %v310_v63, 0.0  ;;  %v541_v12 = vmax.f32 %v317_v0, 0.0  ;;  %v311_v17 = vld [vmem:[%s3990_s1 + $0x320] sm:$0xff]  ;;  %v318_v21 = vld [vmem:[%s3990_s1 + $0x358] sm:$0xff] }
  0x49   : > { %2093 = vmatpush1.bf16.msra.mxu0 %v2092_v52  ;;  %v2160_v15 = vpack.c.bf16 %v514_v59, %v507_v54  ;;  %v2098_v16 = vpack.c.bf16 %v527_v61, %v520_v60  ;;  %v2162_v18 = vpack.c.bf16 %v529_v3, %v522_v2  ;;  %v536_v19 = vmax.f32 %v312_v7, 0.0  ;;  %v324_v22 = vld [vmem:[%s3990_s1 + $0x388] sm:$0xff]  ;;  %v331_v23 = vld [vmem:[%s3990_s1 + $0x3c0] sm:$0xff]  ;;  %v326_v27 = vld [vmem:[%s3990_s1 + $0x398] sm:$0xff] }
  0x4a   : > { %2095 = vmatprep.subr.bf16.mxu0 %v2094_v58  ;;  %v543_v20 = vmax.f32 %v319_v8, 0.0  ;;  %v533_v24 = vmax.f32 %v309_v13, 0.0  ;;  %v540_v25 = vmax.f32 %v316_v14, 0.0  ;;  %v323_v26 = vld [vmem:[%s3990_s1 + $0x380] sm:$0xff]  ;;  %v333_v28 = vld [vmem:[%s3990_s1 + $0x3d0] sm:$0xff]  ;;  %v2100_v29 = vpack.c.bf16 %v526_v6, %v519_v5  ;;  %v330_v32 = vld [vmem:[%s3990_s1 + $0x3b8] sm:$0xff] }
  0x4b   : > { %2157 = vmatpush1.bf16.msra.mxu1 %v2156_v53  ;;  %v2164_v30 = vpack.c.bf16 %v528_v10, %v521_v9  ;;  %v2102_v31 = vpack.c.bf16 %v541_v12, %v534_v11  ;;  %v325_v33 = vld [vmem:[%s3990_s1 + $0x390] sm:$0xff]  ;;  %v332_v34 = vld [vmem:[%s3990_s1 + $0x3c8] sm:$0xff]  ;;  %v535_v35 = vmax.f32 %v311_v17, 0.0  ;;  %v542_v36 = vmax.f32 %v318_v21, 0.0  ;;  %v338_v39 = vld [vmem:[%s3990_s1 + $0x3f8] sm:$0xff] }
  0x4c   : > { %2159 = vmatprep.subr.bf16.mxu1 %v2158_v1  ;;  %v548_v37 = vmax.f32 %v324_v22, 0.0  ;;  %v555_v38 = vmax.f32 %v331_v23, 0.0  ;;  %v345_v40 = vld [vmem:[%s3990_s1 + $0x430] sm:$0xff]  ;;  %v2166_v41 = vpack.c.bf16 %v543_v20, %v536_v19  ;;  %v550_v42 = vmax.f32 %v326_v27, 0.0  ;;  %v340_v47 = vld [vmem:[%s3990_s1 + $0x408] sm:$0xff]  ;;  %v347_v48 = vld [vmem:[%s3990_s1 + $0x440] sm:$0xff] }
  0x4d   : > { %2097 = vmatpush1.bf16.msra.mxu0 %v2096_v4  ;;  %v557_v43 = vmax.f32 %v333_v28, 0.0  ;;  %v2104_v44 = vpack.c.bf16 %v540_v25, %v533_v24  ;;  %v547_v45 = vmax.f32 %v323_v26, 0.0  ;;  %v554_v46 = vmax.f32 %v330_v32, 0.0  ;;  %v337_v53 = vld [vmem:[%s3990_s1 + $0x3f0] sm:$0xff]  ;;  %v344_v54 = vld [vmem:[%s3990_s1 + $0x428] sm:$0xff]  ;;  %v339_v57 = vld [vmem:[%s3990_s1 + $0x400] sm:$0xff] }
  0x4e   : > { %2099 = vmatprep.subr.bf16.mxu0 %v2098_v16  ;;  %v549_v49 = vmax.f32 %v325_v33, 0.0  ;;  %v556_v50 = vmax.f32 %v332_v34, 0.0  ;;  %v562_v51 = vmax.f32 %v338_v39, 0.0  ;;  %v569_v52 = vmax.f32 %v345_v40, 0.0  ;;  %v346_v61 = vld [vmem:[%s3990_s1 + $0x438] sm:$0xff]  ;;  %v352_v62 = vld [vmem:[%s3990_s1 + $0x468] sm:$0xff] }
  0x4f   : > { %2161 = vmatpush1.bf16.msra.mxu1 %v2160_v15  ;;  %v2168_v55 = vpack.c.bf16 %v542_v36, %v535_v35  ;;  %v2106_v56 = vpack.c.bf16 %v555_v38, %v548_v37  ;;  %v2170_v58 = vpack.c.bf16 %v557_v43, %v550_v42  ;;  %v564_v59 = vmax.f32 %v340_v47, 0.0  ;;  %v359_v63 = vld [vmem:[%s3990_s1 + $0x4a0] sm:$0xff]  ;;  %v354_v3 = vld [vmem:[%s3990_s1 + $0x478] sm:$0xff]  ;;  %v361_v4 = vld [vmem:[%s3990_s1 + $0x4b0] sm:$0xff] }
  0x50   : > { %2163 = vmatprep.subr.bf16.mxu1 %v2162_v18  ;;  %v571_v60 = vmax.f32 %v347_v48, 0.0  ;;  %v561_v0 = vmax.f32 %v337_v53, 0.0  ;;  %v568_v1 = vmax.f32 %v344_v54, 0.0  ;;  %v351_v2 = vld [vmem:[%s3990_s1 + $0x460] sm:$0xff]  ;;  %v2108_v5 = vpack.c.bf16 %v554_v46, %v547_v45  ;;  %v358_v8 = vld [vmem:[%s3990_s1 + $0x498] sm:$0xff]  ;;  %v353_v9 = vld [vmem:[%s3990_s1 + $0x470] sm:$0xff] }
  0x51   : > { %2101 = vmatpush1.bf16.msra.mxu0 %v2100_v29  ;;  %v2172_v6 = vpack.c.bf16 %v556_v50, %v549_v49  ;;  %v2110_v7 = vpack.c.bf16 %v569_v52, %v562_v51  ;;  %v360_v10 = vld [vmem:[%s3990_s1 + $0x4a8] sm:$0xff]  ;;  %v563_v11 = vmax.f32 %v339_v57, 0.0  ;;  %v570_v12 = vmax.f32 %v346_v61, 0.0  ;;  %v366_v15 = vld [vmem:[%s3990_s1 + $0x4d8] sm:$0xff]  ;;  %v373_v16 = vld [vmem:[%s3990_s1 + $0x510] sm:$0xff] }
  0x52   : > { %2103 = vmatprep.subr.bf16.mxu0 %v2102_v31  ;;  %v576_v13 = vmax.f32 %v352_v62, 0.0  ;;  %v583_v14 = vmax.f32 %v359_v63, 0.0  ;;  %v2174_v17 = vpack.c.bf16 %v571_v60, %v564_v59  ;;  %v578_v18 = vmax.f32 %v354_v3, 0.0  ;;  %v368_v23 = vld [vmem:[%s3990_s1 + $0x4e8] sm:$0xff]  ;;  %v375_v24 = vld [vmem:[%s3990_s1 + $0x520] sm:$0xff]  ;;  %v365_v29 = vld [vmem:[%s3990_s1 + $0x4d0] sm:$0xff] }
  0x53   : > { %2165 = vmatpush1.bf16.msra.mxu1 %v2164_v30  ;;  %v585_v19 = vmax.f32 %v361_v4, 0.0  ;;  %v2112_v20 = vpack.c.bf16 %v568_v1, %v561_v0  ;;  %v575_v21 = vmax.f32 %v351_v2, 0.0  ;;  %v582_v22 = vmax.f32 %v358_v8, 0.0  ;;  %v372_v30 = vld [vmem:[%s3990_s1 + $0x508] sm:$0xff]  ;;  %v367_v33 = vld [vmem:[%s3990_s1 + $0x4e0] sm:$0xff]  ;;  %v374_v34 = vld [vmem:[%s3990_s1 + $0x518] sm:$0xff] }
  0x54   : > { %2167 = vmatprep.subr.bf16.mxu1 %v2166_v41  ;;  %v577_v25 = vmax.f32 %v353_v9, 0.0  ;;  %v584_v26 = vmax.f32 %v360_v10, 0.0  ;;  %v590_v27 = vmax.f32 %v366_v15, 0.0  ;;  %v597_v28 = vmax.f32 %v373_v16, 0.0  ;;  %v380_v38 = vld [vmem:[%s3990_s1 + $0x548] sm:$0xff]  ;;  %v387_v39 = vld [vmem:[%s3990_s1 + $0x580] sm:$0xff] }
  0x55   : > { %2105 = vmatpush1.bf16.msra.mxu0 %v2104_v44  ;;  %v2176_v31 = vpack.c.bf16 %v570_v12, %v563_v11  ;;  %v2114_v32 = vpack.c.bf16 %v583_v14, %v576_v13  ;;  %v2178_v35 = vpack.c.bf16 %v585_v19, %v578_v18  ;;  %v592_v36 = vmax.f32 %v368_v23, 0.0  ;;  %v379_v40 = vld [vmem:[%s3990_s1 + $0x540] sm:$0xff]  ;;  %v386_v43 = vld [vmem:[%s3990_s1 + $0x578] sm:$0xff]  ;;  %v389_v45 = vld [vmem:[%s3990_s1 + $0x590] sm:$0xff] }
  0x56   : > { %2107 = vmatprep.subr.bf16.mxu0 %v2106_v56  ;;  %v599_v37 = vmax.f32 %v375_v24, 0.0  ;;  %v589_v41 = vmax.f32 %v365_v29, 0.0  ;;  %v596_v42 = vmax.f32 %v372_v30, 0.0  ;;  %v382_v44 = vld [vmem:[%s3990_s1 + $0x558] sm:$0xff]  ;;  %v2116_v46 = vpack.c.bf16 %v582_v22, %v575_v21  ;;  %v381_v49 = vld [vmem:[%s3990_s1 + $0x550] sm:$0xff]  ;;  %v388_v50 = vld [vmem:[%s3990_s1 + $0x588] sm:$0xff] }
  0x57   : > { %2169 = vmatpush1.bf16.msra.mxu1 %v2168_v55  ;;  %v2180_v47 = vpack.c.bf16 %v584_v26, %v577_v25  ;;  %v2118_v48 = vpack.c.bf16 %v597_v28, %v590_v27  ;;  %v660_v51 = vld [vmem:[%s2572_s28 + $0x8] sm:$0xff]  ;;  %v591_v52 = vmax.f32 %v367_v33, 0.0  ;;  %v598_v53 = vmax.f32 %v374_v34, 0.0  ;;  %v394_v56 = vld [vmem:[%s3990_s1 + $0x5b8] sm:$0xff]  ;;  %v401_v57 = vld [vmem:[%s3990_s1 + $0x5f0] sm:$0xff] }
  0x58   : > { %2171 = vmatprep.subr.bf16.mxu1 %v2170_v58  ;;  %v604_v54 = vmax.f32 %v380_v38, 0.0  ;;  %v611_v55 = vmax.f32 %v387_v39, 0.0  ;;  %v2182_v58 = vpack.c.bf16 %v599_v37, %v592_v36  ;;  %v606_v59 = vmax.f32 %v382_v44, 0.0  ;;  %787 = vmatprep.mubr.f32.mxu0 %v660_v51  ;;  %v396_v0 = vld [vmem:[%s3990_s1 + $0x5c8] sm:$0xff]  ;;  %v403_v1 = vld [vmem:[%s3990_s1 + $0x600] sm:$0xff]  ;;  %v402_v14 = vld [vmem:[%s3990_s1 + $0x5f8] sm:$0xff] }
  0x59   : > { %2109 = vmatpush1.bf16.msra.mxu0 %v2108_v5  ;;  %v613_v60 = vmax.f32 %v389_v45, 0.0  ;;  %v2120_v61 = vpack.c.bf16 %v596_v42, %v589_v41  ;;  %v603_v62 = vmax.f32 %v379_v40, 0.0  ;;  %v610_v63 = vmax.f32 %v386_v43, 0.0  ;;  %1044 = vmatprep.mubr.f32.mxu1 %v660_v51  ;;  %v395_v10 = vld [vmem:[%s3990_s1 + $0x5c0] sm:$0xff]  ;;  %v408_v15 = vld [vmem:[%s3990_s1 + $0x628] sm:$0xff]  ;;  %v417_v21 = vld [vmem:[%s3990_s1 + $0x670] sm:$0xff] }
  0x5a   : > { %2111 = vmatprep.subr.bf16.mxu0 %v2110_v7  ;;  %v605_v2 = vmax.f32 %v381_v49, 0.0  ;;  %v612_v3 = vmax.f32 %v388_v50, 0.0  ;;  %v618_v4 = vmax.f32 %v394_v56, 0.0  ;;  %v625_v5 = vmax.f32 %v401_v57, 0.0  ;;  %v400_v7 = vld [vmem:[%s3990_s1 + $0x5e8] sm:$0xff]  ;;  %v415_v16 = vld [vmem:[%s3990_s1 + $0x660] sm:$0xff] }
  0x5b   : > { %2173 = vmatpush1.bf16.msra.mxu1 %v2172_v6  ;;  %v393_v6 = vld [vmem:[%s3990_s1 + $0x5b0] sm:$0xff]  ;;  %v2184_v8 = vpack.c.bf16 %v598_v53, %v591_v52  ;;  %v2122_v9 = vpack.c.bf16 %v611_v55, %v604_v54  ;;  %v2186_v11 = vpack.c.bf16 %v613_v60, %v606_v59  ;;  %v620_v12 = vmax.f32 %v396_v0, 0.0  ;;  %v407_v19 = vld [vmem:[%s3990_s1 + $0x620] sm:$0xff]  ;;  %v414_v25 = vld [vmem:[%s3990_s1 + $0x658] sm:$0xff] }
  0x5c   : > { %2175 = vmatprep.subr.bf16.mxu1 %v2174_v17  ;;  %v627_v13 = vmax.f32 %v403_v1, 0.0  ;;  %v617_v17 = vmax.f32 %v393_v6, 0.0  ;;  %v624_v18 = vmax.f32 %v400_v7, 0.0  ;;  %v2124_v22 = vpack.c.bf16 %v610_v63, %v603_v62  ;;  %v409_v26 = vld [vmem:[%s3990_s1 + $0x630] sm:$0xff]  ;;  %v416_v27 = vld [vmem:[%s3990_s1 + $0x668] sm:$0xff]  ;;  %v431_v41 = vld [vmem:[%s3990_s1 + $0x6e0] sm:$0xff] }
  0x5d   : > { %2113 = vmatpush1.bf16.msra.mxu0 %v2112_v20  ;;  %v410_v20 = vld [vmem:[%s3990_s1 + $0x638] sm:$0xff]  ;;  %v2188_v23 = vpack.c.bf16 %v612_v3, %v605_v2  ;;  %v2126_v24 = vpack.c.bf16 %v625_v5, %v618_v4  ;;  %v619_v28 = vmax.f32 %v395_v10, 0.0  ;;  %v626_v29 = vmax.f32 %v402_v14, 0.0  ;;  %v429_v33 = vld [vmem:[%s3990_s1 + $0x6d0] sm:$0xff]  ;;  %v424_v40 = vld [vmem:[%s3990_s1 + $0x6a8] sm:$0xff] }
  0x5e   : > { %2115 = vmatprep.subr.bf16.mxu0 %v2114_v32  ;;  %v632_v30 = vmax.f32 %v408_v15, 0.0  ;;  %v422_v32 = vld [vmem:[%s3990_s1 + $0x698] sm:$0xff]  ;;  %v2190_v34 = vpack.c.bf16 %v627_v13, %v620_v12  ;;  %v641_v36 = vmax.f32 %v417_v21, 0.0  ;;  %v2128_v37 = vpack.c.bf16 %v624_v18, %v617_v17  ;;  %v428_v49 = vld [vmem:[%s3990_s1 + $0x6c8] sm:$0xff]  ;;  %v423_v50 = vld [vmem:[%s3990_s1 + $0x6a0] sm:$0xff] }
  0x5f   : > { %2177 = vmatpush1.bf16.msra.mxu1 %v2176_v31  ;;  %v639_v31 = vmax.f32 %v415_v16, 0.0  ;;  %v631_v38 = vmax.f32 %v407_v19, 0.0  ;;  %v638_v39 = vmax.f32 %v414_v25, 0.0  ;;  %v633_v42 = vmax.f32 %v409_v26, 0.0  ;;  %v430_v54 = vld [vmem:[%s3990_s1 + $0x6d8] sm:$0xff]  ;;  %v216_v55 = vld [vmem:[%s3990_s1 + $0x28] sm:$0xff] }
  0x60   : > { %2179 = vmatprep.subr.bf16.mxu1 %v2178_v35  ;;  %v634_v35 = vmax.f32 %v410_v20, 0.0  ;;  %v640_v43 = vmax.f32 %v416_v27, 0.0  ;;  %v646_v44 = vmax.f32 %v422_v32, 0.0  ;;  %v653_v45 = vmax.f32 %v429_v33, 0.0  ;;  %v223_v56 = vld [vmem:[%s3990_s1 + $0x60] sm:$0xff]  ;;  %v222_v3 = vld [vmem:[%s3990_s1 + $0x58] sm:$0xff] }
  0x61   : > { %2117 = vmatpush1.bf16.msra.mxu0 %v2116_v46  ;;  %v2192_v46 = vpack.c.bf16 %v626_v29, %v619_v28  ;;  %v648_v52 = vmax.f32 %v424_v40, 0.0  ;;  %v655_v53 = vmax.f32 %v431_v41, 0.0  ;;  %v2132_v57 = vpack.c.bf16 %v638_v39, %v631_v38  ;;  %v215_v2 = vld [vmem:[%s3990_s1 + $0x20] sm:$0xff]  ;;  %v217_v5 = vld [vmem:[%s3990_s1 + $0x30] sm:$0xff]  ;;  %v224_v6 = vld [vmem:[%s3990_s1 + $0x68] sm:$0xff] }
  0x62   : > { %2119 = vmatprep.subr.bf16.mxu0 %v2118_v48  ;;  %v421_v48 = vld [vmem:[%s3990_s1 + $0x690] sm:$0xff]  ;;  %v2194_v51 = vpack.c.bf16 %v641_v36, %v634_v35  ;;  %v2134_v59 = vpack.c.bf16 %v653_v45, %v646_v44  ;;  %v647_v62 = vmax.f32 %v423_v50, 0.0  ;;  %v654_v63 = vmax.f32 %v430_v54, 0.0  ;;  %v230_v7 = vld [vmem:[%s3990_s1 + $0x98] sm:$0xff]  ;;  %v236_v17 = vld [vmem:[%s3990_s1 + $0xc8] sm:$0xff] }
  0x63   : > { %2181 = vmatpush1.bf16.msra.mxu1 %v2180_v47  ;;  %v2130_v47 = vpack.c.bf16 %v639_v31, %v632_v30  ;;  %v645_v60 = vmax.f32 %v421_v48, 0.0  ;;  %v440_v0 = vmax.f32 %v216_v55, 0.0  ;;  %v447_v1 = vmax.f32 %v223_v56, 0.0  ;;  %v229_v16 = vld [vmem:[%s3990_s1 + $0x90] sm:$0xff]  ;;  %v231_v20 = vld [vmem:[%s3990_s1 + $0xa0] sm:$0xff]  ;;  %v238_v21 = vld [vmem:[%s3990_s1 + $0xd8] sm:$0xff] }
  0x64   : > { %2183 = vmatprep.subr.bf16.mxu1 %v2182_v58  ;;  %v2196_v58 = vpack.c.bf16 %v640_v43, %v633_v42  ;;  %v2198_v4 = vpack.c.bf16 %v655_v53, %v648_v52  ;;  %v439_v10 = vmax.f32 %v215_v2, 0.0  ;;  %v2200_v12 = vpack.c.bf16 %v654_v63, %v647_v62  ;;  %v3009_v29 = vld [vmem:[%s2572_s28 + $0x18] sm:$0xff]  ;;  %v243_v36 = vld [vmem:[%s3990_s1 + $0x100] sm:$0xff]  ;;  %v245_v38 = vld [vmem:[%s3990_s1 + $0x110] sm:$0xff] }
  0x65   : > { %2121 = vmatpush1.bf16.msra.mxu0 %v2120_v61  ;;  %v652_v61 = vmax.f32 %v428_v49, 0.0  ;;  %v2202_v13 = vpack.c.bf16 %v447_v1, %v440_v0  ;;  %v441_v14 = vmax.f32 %v217_v5, 0.0  ;;  %v448_v15 = vmax.f32 %v224_v6, 0.0  ;;  %v252_v39 = vld [vmem:[%s3990_s1 + $0x148] sm:$0xff]  ;;  %v258_v40 = vld [vmem:[%s3990_s1 + $0x178] sm:$0xff]  ;;  %v265_v41 = vld [vmem:[%s3990_s1 + $0x1b0] sm:$0xff] }
  0x66   : > { %2123 = vmatprep.subr.bf16.mxu0 %v2122_v9  ;;  %v454_v18 = vmax.f32 %v230_v7, 0.0  ;;  %v453_v26 = vmax.f32 %v229_v16, 0.0  ;;  %v460_v27 = vmax.f32 %v236_v17, 0.0  ;;  %v455_v30 = vmax.f32 %v231_v20, 0.0  ;;  %v3033_v42 = vld [vmem:[%s2572_s28 + $0x10] sm:$0xff]  ;;  %v3037_v44 = vld [vmem:[%s2572_s28 + $0x28] sm:$0xff] }
  0x67   : > { %2185 = vmatpush1.bf16.msra.mxu1 %v2184_v8  ;;  %v237_v8 = vld [vmem:[%s3990_s1 + $0xd0] sm:$0xff]  ;;  %v2136_v9 = vpack.c.bf16 %v652_v61, %v645_v60  ;;  %v2267_v28 = vpack.c.bf16 %v448_v15, %v441_v14  ;;  %v462_v31 = vmax.f32 %v238_v21, 0.0  ;;  %v2459_v32 = vmov 0.0|0.0   ;;  %v264_v50 = vld [vmem:[%s3990_s1 + $0x1a8] sm:$0xff]  ;;  %v259_v55 = vld [vmem:[%s3990_s1 + $0x180] sm:$0xff] }
  0x68   : > { %2187 = vmatprep.subr.bf16.mxu1 %v2186_v11  ;;  %v446_v11 = vmax.f32 %v222_v3, 0.0  ;;  %v461_v19 = vmax.f32 %v237_v8, 0.0  ;;  %v2208_v43 = vpack.c.bf16 %v460_v27, %v453_v26  ;;  %v469_v48 = vmax.f32 %v245_v38, 0.0  ;;  %v257_v49 = vld [vmem:[%s3990_s1 + $0x170] sm:$0xff]  ;;  %v266_v56 = vld [vmem:[%s3990_s1 + $0x1b8] sm:$0xff]  ;;  %v271_v6 = vld [vmem:[%s3990_s1 + $0x1e0] sm:$0xff] }
  0x69   : > { %2125 = vmatpush1.bf16.msra.mxu0 %v2124_v22  ;;  %v244_v22 = vld [vmem:[%s3990_s1 + $0x108] sm:$0xff]  ;;  %v2270_v45 = vpack.c.bf16 %v462_v31, %v455_v30  ;;  %v476_v52 = vmax.f32 %v252_v39, 0.0  ;;  %v482_v53 = vmax.f32 %v258_v40, 0.0  ;;  %v489_v54 = vmax.f32 %v265_v41, 0.0  ;;  %v3067_v62 = vld [vmem:[%s2572_s28 + $0x38] sm:$0xff]  ;;  %v273_v8 = vld [vmem:[%s3990_s1 + $0x1f0] sm:$0xff] }
  0x6a   : > { %2127 = vmatprep.subr.bf16.mxu0 %v2126_v24  ;;  %v3006_v24 = vld [vmem:[%s2572_s28] sm:$0xff]  ;;  %v2204_v25 = vpack.c.bf16 %v446_v11, %v439_v10  ;;  %v2206_v33 = vpack.c.bf16 %v461_v19, %v454_v18  ;;  %v481_v60 = vmax.f32 %v257_v49, 0.0  ;;  %v488_v61 = vmax.f32 %v264_v50, 0.0  ;;  %v278_v7 = vld [vmem:[%s3990_s1 + $0x218] sm:$0xff]  ;;  %v293_v11 = vld [vmem:[%s3990_s1 + $0x290] sm:$0xff] }
  0x6b   : > { %2189 = vmatpush1.bf16.msra.mxu1 %v2188_v23  ;;  %v251_v23 = vld [vmem:[%s3990_s1 + $0x140] sm:$0xff]  ;;  %v483_v0 = vmax.f32 %v259_v55, 0.0  ;;  %v490_v1 = vmax.f32 %v266_v56, 0.0  ;;  %v2273_v2 = vpack.c.bf16 %v476_v52, %v469_v48  ;;  %v2214_v3 = vpack.c.bf16 %v489_v54, %v482_v53  ;;  %v286_v10 = vld [vmem:[%s3990_s1 + $0x258] sm:$0xff]  ;;  %v3096_v14 = vld [vmem:[%s2572_s28 + $0x48] sm:$0xff] }
  0x6c   : > { %2191 = vmatprep.subr.bf16.mxu1 %v2190_v34  ;;  %v468_v34 = vmax.f32 %v244_v22, 0.0  ;;  %v475_v35 = vmax.f32 %v251_v23, 0.0  ;;  %v495_v16 = vmax.f32 %v271_v6, 0.0  ;;  %v502_v17 = vmax.f32 %v278_v7, 0.0  ;;  %v285_v19 = vld [vmem:[%s3990_s1 + $0x250] sm:$0xff]  ;;  %v292_v20 = vld [vmem:[%s3990_s1 + $0x288] sm:$0xff] }
  0x6d   : > { %2129 = vmatpush1.bf16.msra.mxu0 %v2128_v37  ;;  %v250_v37 = vld [vmem:[%s3990_s1 + $0x138] sm:$0xff]  ;;  %v2276_v15 = vpack.c.bf16 %v490_v1, %v483_v0  ;;  %v497_v18 = vmax.f32 %v273_v8, 0.0  ;;  %v510_v23 = vmax.f32 %v286_v10, 0.0  ;;  %v287_v26 = vld [vmem:[%s3990_s1 + $0x260] sm:$0xff]  ;;  %v308_v48 = vld [vmem:[%s3990_s1 + $0x308] sm:$0xff] }
  0x6e   : > { %2131 = vmatprep.subr.bf16.mxu0 %v2130_v47  ;;  %v474_v47 = vmax.f32 %v250_v37, 0.0  ;;  %v294_v27 = vld [vmem:[%s3990_s1 + $0x298] sm:$0xff]  ;;  %v307_v30 = vld [vmem:[%s3990_s1 + $0x300] sm:$0xff]  ;;  %v511_v37 = vmax.f32 %v287_v26, 0.0  ;;  %v321_v50 = vld [vmem:[%s3990_s1 + $0x370] sm:$0xff] }
  0x6f   : > { %2193 = vmatpush1.bf16.msra.mxu1 %v2192_v46  ;;  %v467_v46 = vmax.f32 %v243_v36, 0.0  ;;  %v3121_v31 = vld [vmem:[%s2572_s28 + $0x40] sm:$0xff]  ;;  %v2220_v36 = vpack.c.bf16 %v502_v17, %v495_v16  ;;  %v518_v38 = vmax.f32 %v294_v27, 0.0  ;;  %v314_v49 = vld [vmem:[%s3990_s1 + $0x338] sm:$0xff]  ;;  %v3154_v53 = vld [vmem:[%s2572_s28 + $0x68] sm:$0xff]  ;;  %v545_v1 = vmax.f32 %v321_v50, 0.0 }
  0x70   : > { %2195 = vmatprep.subr.bf16.mxu1 %v2194_v51  ;;  %v2210_v51 = vpack.c.bf16 %v475_v35, %v468_v34  ;;  %v516_v34 = vmax.f32 %v292_v20, 0.0  ;;  %v3125_v35 = vld [vmem:[%s2572_s28 + $0x58] sm:$0xff]  ;;  %v538_v0 = vmax.f32 %v314_v49, 0.0  ;;  %v3179_v6 = vld [vmem:[%s2572_s28 + $0x60] sm:$0xff]  ;;  %v3208_v26 = vld [vmem:[%s2572_s28 + $0x70] sm:$0xff] }
  0x71   : > { %2133 = vmatpush1.bf16.msra.mxu0 %v2132_v57  ;;  %v272_v57 = vld [vmem:[%s3990_s1 + $0x1e8] sm:$0xff]  ;;  %v2212_v63 = vpack.c.bf16 %v474_v47, %v467_v46  ;;  %v306_v46 = vld [vmem:[%s3990_s1 + $0x2f8] sm:$0xff]  ;;  %v301_v47 = vld [vmem:[%s3990_s1 + $0x2d0] sm:$0xff]  ;;  %v2282_v54 = vpack.c.bf16 %v518_v38, %v511_v37 }
  0x72   : > { %2135 = vmatprep.subr.bf16.mxu0 %v2134_v59  ;;  %v3063_v59 = vld [vmem:[%s2572_s28 + $0x20] sm:$0xff]  ;;  %v530_v56 = vmax.f32 %v306_v46, 0.0  ;;  %v2230_v16 = vpack.c.bf16 %v545_v1, %v538_v0  ;;  %v334_v20 = vld [vmem:[%s3990_s1 + $0x3d8] sm:$0xff]  ;;  %v341_v37 = vld [vmem:[%s3990_s1 + $0x410] sm:$0xff] }
  0x73   : > { %2197 = vmatpush1.bf16.msra.mxu1 %v2196_v58  ;;  %v279_v58 = vld [vmem:[%s3990_s1 + $0x220] sm:$0xff]  ;;  %v348_v38 = vld [vmem:[%s3990_s1 + $0x448] sm:$0xff]  ;;  %v350_v46 = vld [vmem:[%s3990_s1 + $0x458] sm:$0xff]  ;;  %v565_v50 = vmax.f32 %v341_v37, 0.0 }
  0x74   : > { %2199 = vmatprep.subr.bf16.mxu1 %v2198_v4  ;;  %v496_v4 = vmax.f32 %v272_v57, 0.0  ;;  %v503_v5 = vmax.f32 %v279_v58, 0.0  ;;  %v525_v57 = vmax.f32 %v301_v47, 0.0  ;;  %v313_v58 = vld [vmem:[%s3990_s1 + $0x330] sm:$0xff]  ;;  %v356_v47 = vld [vmem:[%s3990_s1 + $0x488] sm:$0xff]  ;;  %v3237_v49 = vld [vmem:[%s2572_s28 + $0x80] sm:$0xff] }
  0x75   : > { %2137 = vmatpush1.bf16.msra.mxu0 %v2136_v9  ;;  %v280_v9 = vld [vmem:[%s3990_s1 + $0x228] sm:$0xff]  ;;  %v537_v7 = vmax.f32 %v313_v58, 0.0  ;;  %v355_v0 = vld [vmem:[%s3990_s1 + $0x480] sm:$0xff]  ;;  %v362_v1 = vld [vmem:[%s3990_s1 + $0x4b8] sm:$0xff] }
  0x76   : > { %2203 = vmatprep.subr.bf16.mxu0 %v2202_v13  ;;  %v2216_v13 = vpack.c.bf16 %v488_v61, %v481_v60  ;;  %v2218_v21 = vpack.c.bf16 %v503_v5, %v496_v4  ;;  %v504_v22 = vmax.f32 %v280_v9, 0.0  ;;  %v320_v60 = vld [vmem:[%s3990_s1 + $0x368] sm:$0xff]  ;;  %v335_v5 = vld [vmem:[%s3990_s1 + $0x3e0] sm:$0xff]  ;;  %v3183_v9 = vld [vmem:[%s2572_s28 + $0x78] sm:$0xff] }
  0x77   : > { %2201 = vmatpush1.bf16.msra.mxu1 %v2200_v12  ;;  %v3092_v12 = vld [vmem:[%s2572_s28 + $0x30] sm:$0xff]  ;;  %v328_v4 = vld [vmem:[%s3990_s1 + $0x3a8] sm:$0xff]  ;;  %v544_v8 = vmax.f32 %v320_v60, 0.0  ;;  %v3299_v37 = vld [vmem:[%s2572_s28 + $0xb8] sm:$0xff] }
  0x78   : > { %2266 = vmatprep.subr.bf16.mxu1 %v2459_v32  ;;  %788 = vmatmul.mubr.f32.vlgmr.msra.gmra.mrb[0].mxu0 %v3006_v24  ;;  %v2279_v39 = vpack.c.bf16 %v504_v22, %v497_v18  ;;  %v552_v17 = vmax.f32 %v328_v4, 0.0  ;;  %v559_v18 = vmax.f32 %v335_v5, 0.0  ;;  %v336_v22 = vld [vmem:[%s3990_s1 + $0x3e8] sm:$0xff]  ;;  %v370_v4 = vld [vmem:[%s3990_s1 + $0x4f8] sm:$0xff]  ;;  %v377_v5 = vld [vmem:[%s3990_s1 + $0x530] sm:$0xff] }
  0x79   : > { %2205 = vmatpush1.bf16.msra.mxu0 %v2204_v25  ;;  %793 = vmatprep.mubr.f32.mxu0 %v3009_v29  ;;  %v517_v25 = vmax.f32 %v293_v11, 0.0  ;;  %v2232_v27 = vpack.c.bf16 %v544_v8, %v537_v7  ;;  %v3266_v7 = vld [vmem:[%s2572_s28 + $0x90] sm:$0xff] }
  0x7a   : > { %1045 = vmatmul.mubr.f32.vlgmr.msra.gmra.mrb[0].mxu1 %v3006_v24  ;;  %2207 = vmatprep.subr.bf16.mxu0 %v2206_v33  ;;  %v509_v33 = vmax.f32 %v285_v19, 0.0  ;;  %v327_v19 = vld [vmem:[%s3990_s1 + $0x3a0] sm:$0xff] }
  0x7b   : > { %2268 = vmatpush1.bf16.msra.mxu1 %v2267_v28  ;;  %1050 = vmatprep.mubr.f32.mxu1 %v3009_v29  ;;  %v300_v28 = vld [vmem:[%s3990_s1 + $0x2c8] sm:$0xff]  ;;  %v2222_v40 = vpack.c.bf16 %v517_v25, %v510_v23  ;;  %v342_v23 = vld [vmem:[%s3990_s1 + $0x418] sm:$0xff]  ;;  %v349_v25 = vld [vmem:[%s3990_s1 + $0x450] sm:$0xff] }
  0x7c   : > { %794 = vmatmul.mubr.f32.gmra.mrb[2].mxu0 %v3033_v42  ;;  %2269 = vmatprep.subr.bf16.mxu1 %v2459_v32  ;;  %v524_v41 = vmax.f32 %v300_v28, 0.0  ;;  %v2224_v52 = vpack.c.bf16 %v516_v34, %v509_v33  ;;  %v3212_v28 = vld [vmem:[%s2572_s28 + $0x88] sm:$0xff]  ;;  %v551_v33 = vmax.f32 %v327_v19, 0.0  ;;  %v558_v34 = vmax.f32 %v334_v20, 0.0 }
  0x7d   : > { %799 = vmatprep.mubr.f32.mxu0 %v3037_v44  ;;  %2209 = vmatpush1.bf16.msra.mxu0 %v2208_v43  ;;  %v531_v43 = vmax.f32 %v307_v30, 0.0 }
  0x7e   : > { %1051 = vmatmul.mubr.f32.gmra.mrb[2].mxu1 %v3033_v42  ;;  %2211 = vmatprep.subr.bf16.mxu0 %v2210_v51  ;;  %v3150_v51 = vld [vmem:[%s2572_s28 + $0x50] sm:$0xff] }
  0x7f   : > { %1056 = vmatprep.mubr.f32.mxu1 %v3037_v44  ;;  %2271 = vmatpush1.bf16.msra.mxu1 %v2270_v45  ;;  %v299_v45 = vld [vmem:[%s3990_s1 + $0x2c0] sm:$0xff]  ;;  %v2226_v61 = vpack.c.bf16 %v531_v43, %v524_v41  ;;  %v566_v41 = vmax.f32 %v342_v23, 0.0  ;;  %v573_v43 = vmax.f32 %v349_v25, 0.0  ;;  %v378_v25 = vld [vmem:[%s3990_s1 + $0x538] sm:$0xff] }
  0x80   : > { %800 = vmatmul.mubr.f32.gmra.mrb[4].mxu0 %v3063_v59  ;;  %2272 = vmatprep.subr.bf16.mxu1 %v2459_v32  ;;  %v523_v55 = vmax.f32 %v299_v45, 0.0  ;;  %v343_v45 = vld [vmem:[%s3990_s1 + $0x420] sm:$0xff] }
  0x81   : > { %805 = vmatprep.mubr.f32.mxu0 %v3067_v62  ;;  %2213 = vmatpush1.bf16.msra.mxu0 %v2212_v63  ;;  %v532_v63 = vmax.f32 %v308_v48, 0.0  ;;  %v363_v48 = vld [vmem:[%s3990_s1 + $0x4c0] sm:$0xff]  ;;  %v2238_v60 = vpack.c.bf16 %v573_v43, %v566_v41 }
  0x82   : > { %1057 = vmatmul.mubr.f32.gmra.mrb[4].mxu1 %v3063_v59  ;;  %2215 = vmatprep.subr.bf16.mxu0 %v2214_v3  ;;  %v322_v3 = vld [vmem:[%s3990_s1 + $0x378] sm:$0xff]  ;;  %v2228_v10 = vpack.c.bf16 %v530_v56, %v523_v55  ;;  %v2236_v55 = vpack.c.bf16 %v558_v34, %v551_v33  ;;  %v567_v56 = vmax.f32 %v343_v45, 0.0  ;;  %v371_v23 = vld [vmem:[%s3990_s1 + $0x500] sm:$0xff] }
  0x83   : > { %1062 = vmatprep.mubr.f32.mxu1 %v3067_v62  ;;  %2274 = vmatpush1.bf16.msra.mxu1 %v2273_v2  ;;  %v315_v2 = vld [vmem:[%s3990_s1 + $0x340] sm:$0xff] }
  0x84   : > { %806 = vmatmul.mubr.f32.gmra.mrb[6].mxu0 %v3092_v12  ;;  %2275 = vmatprep.subr.bf16.mxu1 %v2459_v32  ;;  %v539_v11 = vmax.f32 %v315_v2, 0.0  ;;  %v357_v2 = vld [vmem:[%s3990_s1 + $0x490] sm:$0xff]  ;;  %v3295_v33 = vld [vmem:[%s2572_s28 + $0xa0] sm:$0xff] }
  0x85   : > { %811 = vmatprep.mubr.f32.mxu0 %v3096_v14  ;;  %2217 = vmatpush1.bf16.msra.mxu0 %v2216_v13  ;;  %v546_v13 = vmax.f32 %v322_v3, 0.0  ;;  %v364_v3 = vld [vmem:[%s3990_s1 + $0x4c8] sm:$0xff] }
  0x86   : > { %1063 = vmatmul.mubr.f32.gmra.mrb[6].mxu1 %v3092_v12  ;;  %2219 = vmatprep.subr.bf16.mxu0 %v2218_v21  ;;  %v329_v21 = vld [vmem:[%s3990_s1 + $0x3b0] sm:$0xff]  ;;  %v588_v20 = vmax.f32 %v364_v3, 0.0  ;;  %v404_v3 = vld [vmem:[%s3990_s1 + $0x608] sm:$0xff] }
  0x87   : > { %1068 = vmatprep.mubr.f32.mxu1 %v3096_v14  ;;  %2277 = vmatpush1.bf16.msra.mxu1 %v2276_v15  ;;  %v2285_v15 = vpack.c.bf16 %v532_v63, %v525_v57  ;;  %v2288_v30 = vpack.c.bf16 %v546_v13, %v539_v11  ;;  %v574_v57 = vmax.f32 %v350_v46, 0.0  ;;  %v587_v63 = vmax.f32 %v363_v48, 0.0  ;;  %v390_v48 = vld [vmem:[%s3990_s1 + $0x598] sm:$0xff] }
  0x88   : > { %812 = vmatmul.mubr.f32.gmra.mrb[8].mxu0 %v3121_v31  ;;  %2278 = vmatprep.subr.bf16.mxu1 %v2459_v32  ;;  %v579_v13 = vmax.f32 %v355_v0, 0.0  ;;  %v614_v0 = vmax.f32 %v390_v48, 0.0  ;;  %v3386_v48 = vld [vmem:[%s2572_s28 + $0xe8] sm:$0xff] }
  0x89   : > { %817 = vmatprep.mubr.f32.mxu0 %v3125_v35  ;;  %2221 = vmatpush1.bf16.msra.mxu0 %v2220_v36  ;;  %v553_v36 = vmax.f32 %v329_v21, 0.0  ;;  %v2294_v11 = vpack.c.bf16 %v574_v57, %v567_v56  ;;  %v594_v21 = vmax.f32 %v370_v4, 0.0  ;;  %v405_v56 = vld [vmem:[%s3990_s1 + $0x610] sm:$0xff] }
  0x8a   : > { %1069 = vmatmul.mubr.f32.gmra.mrb[8].mxu1 %v3121_v31  ;;  %2223 = vmatprep.subr.bf16.mxu0 %v2222_v40  ;;  %v560_v40 = vmax.f32 %v336_v22, 0.0  ;;  %v601_v22 = vmax.f32 %v377_v5, 0.0  ;;  %v3324_v57 = vld [vmem:[%s2572_s28 + $0xb0] sm:$0xff] }
  0x8b   : > { %1074 = vmatprep.mubr.f32.mxu1 %v3125_v35  ;;  %2280 = vmatpush1.bf16.msra.mxu1 %v2279_v39  ;;  %v2234_v39 = vpack.c.bf16 %v559_v18, %v552_v17  ;;  %v369_v17 = vld [vmem:[%s3990_s1 + $0x4f0] sm:$0xff]  ;;  %v376_v18 = vld [vmem:[%s3990_s1 + $0x528] sm:$0xff] }
  0x8c   : > { %818 = vmatmul.mubr.f32.gmra.mrb[10].mxu0 %v3150_v51  ;;  %2281 = vmatprep.subr.bf16.mxu1 %v2459_v32  ;;  %v2291_v58 = vpack.c.bf16 %v560_v40, %v553_v36  ;;  %v593_v34 = vmax.f32 %v369_v17, 0.0  ;;  %v600_v36 = vmax.f32 %v376_v18, 0.0  ;;  %v602_v40 = vmax.f32 %v378_v25, 0.0  ;;  %v419_v17 = vld [vmem:[%s3990_s1 + $0x680] sm:$0xff] }
  0x8d   : > { %823 = vmatprep.mubr.f32.mxu0 %v3154_v53  ;;  %2225 = vmatpush1.bf16.msra.mxu0 %v2224_v52  ;;  %v572_v52 = vmax.f32 %v348_v38, 0.0  ;;  %v2246_v43 = vpack.c.bf16 %v601_v22, %v594_v21  ;;  %v3353_v18 = vld [vmem:[%s2572_s28 + $0xc0] sm:$0xff]  ;;  %v3357_v21 = vld [vmem:[%s2572_s28 + $0xd8] sm:$0xff] }
  0x8e   : > { %1075 = vmatmul.mubr.f32.gmra.mrb[10].mxu1 %v3150_v51  ;;  %2227 = vmatprep.subr.bf16.mxu0 %v2226_v61  ;;  %v580_v61 = vmax.f32 %v356_v47, 0.0  ;;  %v383_v47 = vld [vmem:[%s3990_s1 + $0x560] sm:$0xff] }
  0x8f   : > { %1080 = vmatprep.mubr.f32.mxu1 %v3154_v53  ;;  %2283 = vmatpush1.bf16.msra.mxu1 %v2282_v54  ;;  %v3241_v54 = vld [vmem:[%s2572_s28 + $0x98] sm:$0xff]  ;;  %v2240_v8 = vpack.c.bf16 %v572_v52, %v565_v50  ;;  %v385_v50 = vld [vmem:[%s3990_s1 + $0x570] sm:$0xff]  ;;  %v392_v52 = vld [vmem:[%s3990_s1 + $0x5a8] sm:$0xff] }
  0x90   : > { %824 = vmatmul.mubr.f32.gmra.mrb[12].mxu0 %v3179_v6  ;;  %2284 = vmatprep.subr.bf16.mxu1 %v2459_v32  ;;  %v2242_v19 = vpack.c.bf16 %v587_v63, %v580_v61  ;;  %v607_v63 = vmax.f32 %v383_v47, 0.0  ;;  %v616_v5 = vmax.f32 %v392_v52, 0.0 }
  0x91   : > { %829 = vmatprep.mubr.f32.mxu0 %v3183_v9  ;;  %2229 = vmatpush1.bf16.msra.mxu0 %v2228_v10  ;;  %v3270_v10 = vld [vmem:[%s2572_s28 + $0xa8] sm:$0xff] }
  0x92   : > { %1081 = vmatmul.mubr.f32.gmra.mrb[12].mxu1 %v3179_v6  ;;  %2231 = vmatprep.subr.bf16.mxu0 %v2230_v16  ;;  %v581_v16 = vmax.f32 %v357_v2, 0.0  ;;  %v397_v2 = vld [vmem:[%s3990_s1 + $0x5d0] sm:$0xff]  ;;  %v2252_v22 = vpack.c.bf16 %v614_v0, %v607_v63 }
  0x93   : > { %1086 = vmatprep.mubr.f32.mxu1 %v3183_v9  ;;  %2286 = vmatpush1.bf16.msra.mxu1 %v2285_v15  ;;  %v586_v15 = vmax.f32 %v362_v1, 0.0  ;;  %v609_v1 = vmax.f32 %v385_v50, 0.0 }
  0x94   : > { %830 = vmatmul.mubr.f32.gmra.mrb[14].mxu0 %v3208_v26  ;;  %2287 = vmatprep.subr.bf16.mxu1 %v2459_v32  ;;  %v2297_v41 = vpack.c.bf16 %v588_v20, %v581_v16  ;;  %v412_v16 = vld [vmem:[%s3990_s1 + $0x648] sm:$0xff]  ;;  %v628_v20 = vmax.f32 %v404_v3, 0.0  ;;  %v427_v3 = vld [vmem:[%s3990_s1 + $0x6c0] sm:$0xff] }
  0x95   : > { %835 = vmatprep.mubr.f32.mxu0 %v3212_v28  ;;  %2233 = vmatpush1.bf16.msra.mxu0 %v2232_v27  ;;  %v384_v27 = vld [vmem:[%s3990_s1 + $0x568] sm:$0xff]  ;;  %v2244_v38 = vpack.c.bf16 %v586_v15, %v579_v13  ;;  %v399_v13 = vld [vmem:[%s3990_s1 + $0x5e0] sm:$0xff]  ;;  %v406_v15 = vld [vmem:[%s3990_s1 + $0x618] sm:$0xff] }
  0x96   : > { %1087 = vmatmul.mubr.f32.gmra.mrb[14].mxu1 %v3208_v26  ;;  %2235 = vmatprep.subr.bf16.mxu0 %v2234_v39  ;;  %v595_v39 = vmax.f32 %v371_v23, 0.0  ;;  %v608_v45 = vmax.f32 %v384_v27, 0.0  ;;  %v623_v23 = vmax.f32 %v399_v13, 0.0  ;;  %v630_v25 = vmax.f32 %v406_v15, 0.0 }
  0x97   : > { %1092 = vmatprep.mubr.f32.mxu1 %v3212_v28  ;;  %2289 = vmatpush1.bf16.msra.mxu1 %v2288_v30  ;;  %v391_v30 = vld [vmem:[%s3990_s1 + $0x5a0] sm:$0xff]  ;;  %v2303_v27 = vpack.c.bf16 %v616_v5, %v609_v1  ;;  %v425_v1 = vld [vmem:[%s3990_s1 + $0x6b0] sm:$0xff] }
  0x98   : > { %836 = vmatmul.mubr.f32.gmra.mrb[16].mxu0 %v3237_v49  ;;  %2290 = vmatprep.subr.bf16.mxu1 %v2459_v32  ;;  %v615_v46 = vmax.f32 %v391_v30, 0.0  ;;  %v2300_v61 = vpack.c.bf16 %v602_v40, %v595_v39  ;;  %v418_v39 = vld [vmem:[%s3990_s1 + $0x678] sm:$0xff]  ;;  %v413_v40 = vld [vmem:[%s3990_s1 + $0x650] sm:$0xff]  ;;  %v2306_v50 = vpack.c.bf16 %v630_v25, %v623_v23  ;;  %v3405_v5 = vld [vmem:[%s2572_s28 + $0xe0] sm:$0xff]  ;;  %v649_v13 = vmax.f32 %v425_v1, 0.0 }
  0x99   : > { %841 = vmatprep.mubr.f32.mxu0 %v3241_v54  ;;  %2237 = vmatpush1.bf16.msra.mxu0 %v2236_v55  ;;  %v398_v55 = vld [vmem:[%s3990_s1 + $0x5d8] sm:$0xff]  ;;  %v3420_v23 = vld [vmem:[%s2572_s28 + $0x108] sm:$0xff] }
  0x9a   : > { %1093 = vmatmul.mubr.f32.gmra.mrb[16].mxu1 %v3237_v49  ;;  %2239 = vmatprep.subr.bf16.mxu0 %v2238_v60  ;;  %v3328_v60 = vld [vmem:[%s2572_s28 + $0xc8] sm:$0xff]  ;;  %v2250_v4 = vpack.c.bf16 %v615_v46, %v608_v45  ;;  %v433_v45 = vld [vmem:[%s3990_s1 + $0x6f0] sm:$0xff] }
  0x9b   : > { %1098 = vmatprep.mubr.f32.mxu1 %v3241_v54  ;;  %2292 = vmatpush1.bf16.msra.mxu1 %v2291_v58  ;;  %v2248_v58 = vpack.c.bf16 %v600_v36, %v593_v34  ;;  %v636_v34 = vmax.f32 %v412_v16, 0.0  ;;  %v643_v36 = vmax.f32 %v419_v17, 0.0  ;;  %v3382_v46 = vld [vmem:[%s2572_s28 + $0xd0] sm:$0xff]  ;;  %v657_v0 = vmax.f32 %v433_v45, 0.0  ;;  %v3471_v45 = vld [vmem:[%s2572_s28 + $0x158] sm:$0xff]  ;;  %v3521_v1 = vld [vmem:[%s2572_s28 + $0x1a8] sm:$0xff] }
  0x9c   : > { %842 = vmatmul.mubr.f32.gmra.mrb[18].mxu0 %v3266_v7  ;;  %2293 = vmatprep.subr.bf16.mxu1 %v2459_v32 }
  0x9d   : > { %847 = vmatprep.mubr.f32.mxu0 %v3270_v10  ;;  %2241 = vmatpush1.bf16.msra.mxu0 %v2240_v8  ;;  %v622_v8 = vmax.f32 %v398_v55, 0.0  ;;  %v642_v55 = vmax.f32 %v418_v39, 0.0  ;;  %v3451_v39 = vld [vmem:[%s2572_s28 + $0x138] sm:$0xff] }
  0x9e   : > { %1099 = vmatmul.mubr.f32.gmra.mrb[18].mxu1 %v3266_v7  ;;  %2243 = vmatprep.subr.bf16.mxu0 %v2242_v19  ;;  %v621_v19 = vmax.f32 %v397_v2, 0.0  ;;  %v432_v2 = vld [vmem:[%s3990_s1 + $0x6e8] sm:$0xff] }
  0x9f   : > { %1104 = vmatprep.mubr.f32.mxu1 %v3270_v10  ;;  %2295 = vmatpush1.bf16.msra.mxu1 %v2294_v11  ;;  %v629_v11 = vmax.f32 %v405_v56, 0.0  ;;  %v637_v56 = vmax.f32 %v413_v40, 0.0  ;;  %v656_v15 = vmax.f32 %v432_v2, 0.0  ;;  %v3457_v40 = vld [vmem:[%s2572_s28 + $0x130] sm:$0xff]  ;;  %v3527_v2 = vld [vmem:[%s2572_s28 + $0x1a0] sm:$0xff] }
  0xa0   : > { %848 = vmatmul.mubr.f32.gmra.mrb[20].mxu0 %v3295_v33  ;;  %2296 = vmatprep.subr.bf16.mxu1 %v2459_v32  ;;  %v2256_v47 = vpack.c.bf16 %v628_v20, %v621_v19  ;;  %v651_v19 = vmax.f32 %v427_v3, 0.0  ;;  %v3531_v3 = vld [vmem:[%s2572_s28 + $0x1b8] sm:$0xff] }
  0xa1   : > { %853 = vmatprep.mubr.f32.mxu0 %v3299_v37  ;;  %2245 = vmatpush1.bf16.msra.mxu0 %v2244_v38  ;;  %v2254_v30 = vpack.c.bf16 %v629_v11, %v622_v8  ;;  %v411_v38 = vld [vmem:[%s3990_s1 + $0x640] sm:$0xff]  ;;  %v3409_v8 = vld [vmem:[%s2572_s28 + $0xf8] sm:$0xff]  ;;  %v2264_v25 = vpack.c.bf16 %v656_v15, %v649_v13 }
  0xa2   : > { %1105 = vmatmul.mubr.f32.gmra.mrb[20].mxu1 %v3295_v33  ;;  %2247 = vmatprep.subr.bf16.mxu0 %v2246_v43  ;;  %v426_v43 = vld [vmem:[%s3990_s1 + $0x6b8] sm:$0xff]  ;;  %v635_v52 = vmax.f32 %v411_v38, 0.0  ;;  %v3447_v38 = vld [vmem:[%s2572_s28 + $0x120] sm:$0xff] }
  0xa3   : > { %1110 = vmatprep.mubr.f32.mxu1 %v3299_v37  ;;  %2298 = vmatpush1.bf16.msra.mxu1 %v2297_v41  ;;  %v420_v41 = vld [vmem:[%s3990_s1 + $0x688] sm:$0xff]  ;;  %v650_v63 = vmax.f32 %v426_v43, 0.0  ;;  %v3467_v43 = vld [vmem:[%s2572_s28 + $0x140] sm:$0xff]  ;;  %v3551_v15 = vld [vmem:[%s2572_s28 + $0x1d8] sm:$0xff] }
  0xa4   : > { %854 = vmatmul.mubr.f32.gmra.mrb[22].mxu0 %v3324_v57  ;;  %2299 = vmatprep.subr.bf16.mxu1 %v2459_v32  ;;  %v2260_v11 = vpack.c.bf16 %v642_v55, %v635_v52  ;;  %v3487_v52 = vld [vmem:[%s2572_s28 + $0x160] sm:$0xff]  ;;  %v3491_v55 = vld [vmem:[%s2572_s28 + $0x178] sm:$0xff] }
  0xa5   : > { %859 = vmatprep.mubr.f32.mxu0 %v3328_v60  ;;  %2249 = vmatpush1.bf16.msra.mxu0 %v2248_v58  ;;  %v2258_v58 = vpack.c.bf16 %v643_v36, %v636_v34  ;;  %v2262_v17 = vpack.c.bf16 %v657_v0, %v650_v63  ;;  %v3431_v34 = vld [vmem:[%s2572_s28 + $0x118] sm:$0xff]  ;;  %v3441_v36 = vld [vmem:[%s2572_s28 + $0x128] sm:$0xff]  ;;  %v3517_v0 = vld [vmem:[%s2572_s28 + $0x190] sm:$0xff] }
  0xa6   : > { %1111 = vmatmul.mubr.f32.gmra.mrb[22].mxu1 %v3324_v57  ;;  %2251 = vmatprep.subr.bf16.mxu0 %v2250_v4  ;;  %v434_v4 = vld [vmem:[%s3990_s1 + $0x6f8] sm:$0xff]  ;;  %v3547_v13 = vld [vmem:[%s2572_s28 + $0x1c0] sm:$0xff] }
  0xa7   : > { %1116 = vmatprep.mubr.f32.mxu1 %v3328_v60  ;;  %2301 = vmatpush1.bf16.msra.mxu1 %v2300_v61  ;;  %v644_v61 = vmax.f32 %v420_v41, 0.0  ;;  %v658_v20 = vmax.f32 %v434_v4, 0.0  ;;  %v3461_v41 = vld [vmem:[%s2572_s28 + $0x148] sm:$0xff]  ;;  %v3511_v63 = vld [vmem:[%s2572_s28 + $0x198] sm:$0xff]  ;;  %v3537_v4 = vld [vmem:[%s2572_s28 + $0x1b0] sm:$0xff] }
  0xa8   : > { %860 = vmatmul.mubr.f32.gmra.mrb[24].mxu0 %v3353_v18  ;;  %2302 = vmatprep.subr.bf16.mxu1 %v2459_v32 }
  0xa9   : > { %865 = vmatprep.mubr.f32.mxu0 %v3357_v21  ;;  %2253 = vmatpush1.bf16.msra.mxu0 %v2252_v22  ;;  %v2309_v16 = vpack.c.bf16 %v644_v61, %v637_v56  ;;  %v3416_v22 = vld [vmem:[%s2572_s28 + $0xf0] sm:$0xff]  ;;  %v3507_v61 = vld [vmem:[%s2572_s28 + $0x180] sm:$0xff] }
  0xaa   : > { %1117 = vmatmul.mubr.f32.gmra.mrb[24].mxu1 %v3353_v18  ;;  %2255 = vmatprep.subr.bf16.mxu0 %v2254_v30  ;;  %v3427_v30 = vld [vmem:[%s2572_s28 + $0x100] sm:$0xff]  ;;  %v3497_v56 = vld [vmem:[%s2572_s28 + $0x170] sm:$0xff] }
  0xab   : > { %1122 = vmatprep.mubr.f32.mxu1 %v3357_v21  ;;  %2304 = vmatpush1.bf16.msra.mxu1 %v2303_v27  ;;  %v2312_v27 = vpack.c.bf16 %v658_v20, %v651_v19  ;;  %v3567_v19 = vld [vmem:[%s2572_s28 + $0x1e0] sm:$0xff]  ;;  %v3571_v20 = vld [vmem:[%s2572_s28 + $0x1f8] sm:$0xff] }
  0xac   : > { %866 = vmatmul.mubr.f32.gmra.mrb[26].mxu0 %v3382_v46  ;;  %2305 = vmatprep.subr.bf16.mxu1 %v2459_v32 }
  0xad   : > { %871 = vmatprep.mubr.f32.mxu0 %v3386_v48  ;;  %2257 = vmatpush1.bf16.msra.mxu0 %v2256_v47  ;;  %v3477_v47 = vld [vmem:[%s2572_s28 + $0x150] sm:$0xff] }
  0xae   : > { %1123 = vmatmul.mubr.f32.gmra.mrb[26].mxu1 %v3382_v46  ;;  %2259 = vmatprep.subr.bf16.mxu0 %v2258_v58  ;;  %v3501_v58 = vld [vmem:[%s2572_s28 + $0x188] sm:$0xff] }
  0xaf   : > { %1128 = vmatprep.mubr.f32.mxu1 %v3386_v48  ;;  %2307 = vmatpush1.bf16.msra.mxu1 %v2306_v50  ;;  %v3481_v50 = vld [vmem:[%s2572_s28 + $0x168] sm:$0xff] }
  0xb0   : > { %872 = vmatmul.mubr.f32.gmra.mrb[28].mxu0 %v3405_v5  ;;  %2308 = vmatprep.subr.bf16.mxu1 %v2459_v32 }
  0xb1   : > { %877 = vmatprep.mubr.f32.mxu0 %v3409_v8  ;;  %2261 = vmatpush1.bf16.msra.mxu0 %v2260_v11  ;;  %v3541_v11 = vld [vmem:[%s2572_s28 + $0x1c8] sm:$0xff] }
  0xb2   : > { %1129 = vmatmul.mubr.f32.gmra.mrb[28].mxu1 %v3405_v5  ;;  %2263 = vmatprep.subr.bf16.mxu0 %v2262_v17  ;;  %v3561_v17 = vld [vmem:[%s2572_s28 + $0x1e8] sm:$0xff] }
  0xb3   : > { %1134 = vmatprep.mubr.f32.mxu1 %v3409_v8  ;;  %2310 = vmatpush1.bf16.msra.mxu1 %v2309_v16  ;;  %v3557_v16 = vld [vmem:[%s2572_s28 + $0x1d0] sm:$0xff] }
  0xb4   : > { %878 = vmatmul.mubr.f32.gmra.mrb[30].mxu0 %v3416_v22  ;;  %2311 = vmatprep.subr.bf16.mxu1 %v2459_v32  ;;  %v3437_v32 = vld [vmem:[%s2572_s28 + $0x110] sm:$0xff] }
  0xb5   : > { %883 = vmatprep.mubr.f32.mxu0 %v3420_v23  ;;  %2265 = vmatpush1.bf16.msra.mxu0 %v2264_v25  ;;  %v3577_v25 = vld [vmem:[%s2572_s28 + $0x1f0] sm:$0xff] }
  0xb6   : > { %1135 = vmatmul.mubr.f32.gmra.mrb[30].mxu1 %v3416_v22 }
  0xb7   : > { %1140 = vmatprep.mubr.f32.mxu1 %v3420_v23  ;;  %2313 = vmatpush1.bf16.msra.mxu1 %v2312_v27  ;;  %v2373_v27 = vld [vmem:[%s2572_s28 + $0x8] sm:$0xff]  ;;  %s2068_s28 = sshll.u32 %s2446_s12, 5 }
  0xb8   : > { %884 = vmatmul.mubr.f32.gmra.mrb[32].mxu0 %v3427_v30  ;;  %p203_p7 = scmp.lt.s32.totalorder %s2068_s28, 127 }
  0xb9   : > { %889 = vmatprep.mubr.f32.mxu0 %v3431_v34 }
  0xba   : > { %1141 = vmatmul.mubr.f32.gmra.mrb[32].mxu1 %v3427_v30  ;;  %s4003_s28 = smov (!%p203_p7, %s2068_s28), 127 }
  0xbb   : > { %1146 = vmatprep.mubr.f32.mxu1 %v3431_v34  ;;  %s2314_s12 = smul.u32 56, %s4003_s28 }
  0xbc   : > { %890 = vmatmul.mubr.f32.gmra.mrb[34].mxu0 %v3437_v32 }
  0xbd   : > { %895 = vmatprep.mubr.f32.mxu0 %v3441_v36  ;;  %s3669_s9 = scalar_lea.vmem %s3991_s2, %s2314_s12 }
  0xbe   : > { %1147 = vmatmul.mubr.f32.gmra.mrb[34].mxu1 %v3437_v32 }
  0xbf   : > { %1152 = vmatprep.mubr.f32.mxu1 %v3441_v36 }
  0xc0   : > { %896 = vmatmul.mubr.f32.gmra.mrb[36].mxu0 %v3447_v38 }
  0xc1   : > { %901 = vmatprep.mubr.f32.mxu0 %v3451_v39 }
  0xc2   : > { %1153 = vmatmul.mubr.f32.gmra.mrb[36].mxu1 %v3447_v38 }
  0xc3   : > { %1158 = vmatprep.mubr.f32.mxu1 %v3451_v39 }
  0xc4   : > { %902 = vmatmul.mubr.f32.gmra.mrb[38].mxu0 %v3457_v40 }
  0xc5   : > { %907 = vmatprep.mubr.f32.mxu0 %v3461_v41 }
  0xc6   : > { %1159 = vmatmul.mubr.f32.gmra.mrb[38].mxu1 %v3457_v40 }
  0xc7   : > { %1164 = vmatprep.mubr.f32.mxu1 %v3461_v41 }
  0xc8   : > { %908 = vmatmul.mubr.f32.gmra.mrb[40].mxu0 %v3467_v43 }
  0xc9   : > { %913 = vmatprep.mubr.f32.mxu0 %v3471_v45 }
  0xca   : > { %1165 = vmatmul.mubr.f32.gmra.mrb[40].mxu1 %v3467_v43 }
  0xcb   : > { %1170 = vmatprep.mubr.f32.mxu1 %v3471_v45 }
  0xcc   : > { %914 = vmatmul.mubr.f32.gmra.mrb[42].mxu0 %v3477_v47 }
  0xcd   : > { %919 = vmatprep.mubr.f32.mxu0 %v3481_v50 }
  0xce   : > { %1171 = vmatmul.mubr.f32.gmra.mrb[42].mxu1 %v3477_v47 }
  0xcf   : > { %1176 = vmatprep.mubr.f32.mxu1 %v3481_v50 }
  0xd0   : > { %920 = vmatmul.mubr.f32.gmra.mrb[44].mxu0 %v3487_v52 }
  0xd1   : > { %925 = vmatprep.mubr.f32.mxu0 %v3491_v55 }
  0xd2   : > { %1177 = vmatmul.mubr.f32.gmra.mrb[44].mxu1 %v3487_v52 }
  0xd3   : > { %1182 = vmatprep.mubr.f32.mxu1 %v3491_v55 }
  0xd4   : > { %926 = vmatmul.mubr.f32.gmra.mrb[46].mxu0 %v3497_v56 }
  0xd5   : > { %931 = vmatprep.mubr.f32.mxu0 %v3501_v58 }
  0xd6   : > { %1183 = vmatmul.mubr.f32.gmra.mrb[46].mxu1 %v3497_v56 }
  0xd7   : > { %1188 = vmatprep.mubr.f32.mxu1 %v3501_v58 }
  0xd8   : > { %932 = vmatmul.mubr.f32.gmra.mrb[48].mxu0 %v3507_v61 }
  0xd9   : > { %937 = vmatprep.mubr.f32.mxu0 %v3511_v63 }
  0xda   : > { %1189 = vmatmul.mubr.f32.gmra.mrb[48].mxu1 %v3507_v61 }
  0xdb   : > { %1194 = vmatprep.mubr.f32.mxu1 %v3511_v63 }
  0xdc   : > { %938 = vmatmul.mubr.f32.gmra.mrb[50].mxu0 %v3517_v0 }
  0xdd   : > { %943 = vmatprep.mubr.f32.mxu0 %v3521_v1 }
  0xde   : > { %1195 = vmatmul.mubr.f32.gmra.mrb[50].mxu1 %v3517_v0 }
  0xdf   : > { %1200 = vmatprep.mubr.f32.mxu1 %v3521_v1 }
  0xe0   : > { %944 = vmatmul.mubr.f32.gmra.mrb[52].mxu0 %v3527_v2 }
  0xe1   : > { %949 = vmatprep.mubr.f32.mxu0 %v3531_v3 }
  0xe2   : > { %1201 = vmatmul.mubr.f32.gmra.mrb[52].mxu1 %v3527_v2 }
  0xe3   : > { %1206 = vmatprep.mubr.f32.mxu1 %v3531_v3 }
  0xe4   : > { %950 = vmatmul.mubr.f32.gmra.mrb[54].mxu0 %v3537_v4 }
  0xe5   : > { %955 = vmatprep.mubr.f32.mxu0 %v3541_v11 }
  0xe6   : > { %1207 = vmatmul.mubr.f32.gmra.mrb[54].mxu1 %v3537_v4 }
  0xe7   : > { %1212 = vmatprep.mubr.f32.mxu1 %v3541_v11 }
  0xe8   : > { %956 = vmatmul.mubr.f32.gmra.mrb[56].mxu0 %v3547_v13 }
  0xe9   : > { %961 = vmatprep.mubr.f32.mxu0 %v3551_v15 }
  0xea   : > { %1213 = vmatmul.mubr.f32.gmra.mrb[56].mxu1 %v3547_v13 }
  0xeb   : > { %1218 = vmatprep.mubr.f32.mxu1 %v3551_v15 }
  0xec   : > { %962 = vmatmul.mubr.f32.gmra.mrb[58].mxu0 %v3557_v16 }
  0xed   : > { %967 = vmatprep.mubr.f32.mxu0 %v3561_v17 }
  0xee   : > { %1219 = vmatmul.mubr.f32.gmra.mrb[58].mxu1 %v3557_v16 }
  0xef   : > { %1224 = vmatprep.mubr.f32.mxu1 %v3561_v17 }
  0xf0   : > { %968 = vmatmul.mubr.f32.gmra.mrb[60].mxu0 %v3567_v19 }
  0xf1   : > { %973 = vmatprep.mubr.f32.mxu0 %v3571_v20 }
  0xf2   : > { %1225 = vmatmul.mubr.f32.gmra.mrb[60].mxu1 %v3567_v19 }
  0xf3   : > { %1230 = vmatprep.mubr.f32.mxu1 %v3571_v20 }
  0xf4   : > { %974 = vmatmul.mubr.f32.gmra.mrb[62].mxu0 %v3577_v25 }
  0xf5   : > { %1301 = vmatprep.mubr.f32.mxu0 %v2373_v27 }
  0xf6   : > { %1231 = vmatmul.mubr.f32.gmra.mrb[62].mxu1 %v3577_v25 }
  0xf7   : > { %1558 = vmatprep.mubr.f32.mxu1 %v2373_v27 }
  0xf8   : > { %1302 = vmatmul.mubr.f32.vlgmr.msra.gmra.mrb[64].mxu0 %v3006_v24 }
  0xf9   : > { %1307 = vmatprep.mubr.f32.mxu0 %v3009_v29 }
  0xfa   : > { %1559 = vmatmul.mubr.f32.vlgmr.msra.gmra.mrb[64].mxu1 %v3006_v24 }
  0xfb   : > { %1563 = vmatprep.mubr.f32.mxu1 %v3009_v29 }
  0xfc   : > { %1308 = vmatmul.mubr.f32.gmra.mrb[66].mxu0 %v3033_v42 }
  0xfd   : > { %1313 = vmatprep.mubr.f32.mxu0 %v3037_v44 }
  0xfe   : > { %1564 = vmatmul.mubr.f32.gmra.mrb[66].mxu1 %v3033_v42 }
  0xff   : > { %1568 = vmatprep.mubr.f32.mxu1 %v3037_v44 }
 0x100   : > { %1314 = vmatmul.mubr.f32.gmra.mrb[68].mxu0 %v3063_v59 }
 0x101   : > { %1319 = vmatprep.mubr.f32.mxu0 %v3067_v62 }
 0x102   : > { %1569 = vmatmul.mubr.f32.gmra.mrb[68].mxu1 %v3063_v59 }
 0x103   : > { %1573 = vmatprep.mubr.f32.mxu1 %v3067_v62 }
 0x104   : > { %1320 = vmatmul.mubr.f32.gmra.mrb[70].mxu0 %v3092_v12 }
 0x105   : > { %1325 = vmatprep.mubr.f32.mxu0 %v3096_v14 }
 0x106   : > { %1574 = vmatmul.mubr.f32.gmra.mrb[70].mxu1 %v3092_v12 }
 0x107   : > { %1578 = vmatprep.mubr.f32.mxu1 %v3096_v14 }
 0x108   : > { %1326 = vmatmul.mubr.f32.gmra.mrb[72].mxu0 %v3121_v31 }
 0x109   : > { %1331 = vmatprep.mubr.f32.mxu0 %v3125_v35 }
 0x10a   : > { %1579 = vmatmul.mubr.f32.gmra.mrb[72].mxu1 %v3121_v31 }
 0x10b   : > { %1583 = vmatprep.mubr.f32.mxu1 %v3125_v35 }
 0x10c   : > { %1332 = vmatmul.mubr.f32.gmra.mrb[74].mxu0 %v3150_v51 }
 0x10d   : > { %1337 = vmatprep.mubr.f32.mxu0 %v3154_v53 }
 0x10e   : > { %1584 = vmatmul.mubr.f32.gmra.mrb[74].mxu1 %v3150_v51 }
 0x10f   : > { %1588 = vmatprep.mubr.f32.mxu1 %v3154_v53 }
 0x110   : > { %1338 = vmatmul.mubr.f32.gmra.mrb[76].mxu0 %v3179_v6 }
 0x111   : > { %1343 = vmatprep.mubr.f32.mxu0 %v3183_v9 }
 0x112   : > { %1589 = vmatmul.mubr.f32.gmra.mrb[76].mxu1 %v3179_v6 }
 0x113   : > { %1593 = vmatprep.mubr.f32.mxu1 %v3183_v9 }
 0x114   : > { %1344 = vmatmul.mubr.f32.gmra.mrb[78].mxu0 %v3208_v26 }
 0x115   : > { %1349 = vmatprep.mubr.f32.mxu0 %v3212_v28 }
 0x116   : > { %1594 = vmatmul.mubr.f32.gmra.mrb[78].mxu1 %v3208_v26 }
 0x117   : > { %1598 = vmatprep.mubr.f32.mxu1 %v3212_v28 }
 0x118   : > { %1350 = vmatmul.mubr.f32.gmra.mrb[80].mxu0 %v3237_v49 }
 0x119   : > { %1355 = vmatprep.mubr.f32.mxu0 %v3241_v54 }
 0x11a   : > { %1599 = vmatmul.mubr.f32.gmra.mrb[80].mxu1 %v3237_v49 }
 0x11b   : > { %1603 = vmatprep.mubr.f32.mxu1 %v3241_v54 }
 0x11c   : > { %1356 = vmatmul.mubr.f32.gmra.mrb[82].mxu0 %v3266_v7 }
 0x11d   : > { %1361 = vmatprep.mubr.f32.mxu0 %v3270_v10 }
 0x11e   : > { %1604 = vmatmul.mubr.f32.gmra.mrb[82].mxu1 %v3266_v7 }
 0x11f   : > { %1608 = vmatprep.mubr.f32.mxu1 %v3270_v10 }
 0x120   : > { %1362 = vmatmul.mubr.f32.gmra.mrb[84].mxu0 %v3295_v33 }
 0x121   : > { %1367 = vmatprep.mubr.f32.mxu0 %v3299_v37 }
 0x122   : > { %1609 = vmatmul.mubr.f32.gmra.mrb[84].mxu1 %v3295_v33 }
 0x123   : > { %1613 = vmatprep.mubr.f32.mxu1 %v3299_v37 }
 0x124   : > { %1368 = vmatmul.mubr.f32.gmra.mrb[86].mxu0 %v3324_v57 }
 0x125   : > { %1373 = vmatprep.mubr.f32.mxu0 %v3328_v60 }
 0x126   : > { %1614 = vmatmul.mubr.f32.gmra.mrb[86].mxu1 %v3324_v57 }
 0x127   : > { %1618 = vmatprep.mubr.f32.mxu1 %v3328_v60 }
 0x128   : > { %1374 = vmatmul.mubr.f32.gmra.mrb[88].mxu0 %v3353_v18 }
 0x129   : > { %1379 = vmatprep.mubr.f32.mxu0 %v3357_v21 }
 0x12a   : > { %1619 = vmatmul.mubr.f32.gmra.mrb[88].mxu1 %v3353_v18 }
 0x12b   : > { %1623 = vmatprep.mubr.f32.mxu1 %v3357_v21 }
 0x12c   : > { %1380 = vmatmul.mubr.f32.gmra.mrb[90].mxu0 %v3382_v46 }
 0x12d   : > { %1385 = vmatprep.mubr.f32.mxu0 %v3386_v48 }
 0x12e   : > { %1624 = vmatmul.mubr.f32.gmra.mrb[90].mxu1 %v3382_v46 }
 0x12f   : > { %1628 = vmatprep.mubr.f32.mxu1 %v3386_v48 }
 0x130   : > { %1386 = vmatmul.mubr.f32.gmra.mrb[92].mxu0 %v3405_v5 }
 0x131   : > { %1391 = vmatprep.mubr.f32.mxu0 %v3409_v8 }
 0x132   : > { %1629 = vmatmul.mubr.f32.gmra.mrb[92].mxu1 %v3405_v5 }
 0x133   : > { %1633 = vmatprep.mubr.f32.mxu1 %v3409_v8 }
 0x134   : > { %1392 = vmatmul.mubr.f32.gmra.mrb[94].mxu0 %v3416_v22 }
 0x135   : > { %1397 = vmatprep.mubr.f32.mxu0 %v3420_v23 }
 0x136   : > { %1634 = vmatmul.mubr.f32.gmra.mrb[94].mxu1 %v3416_v22 }
 0x137   : > { %1638 = vmatprep.mubr.f32.mxu1 %v3420_v23 }
 0x138   : > { %1398 = vmatmul.mubr.f32.gmra.mrb[96].mxu0 %v3427_v30 }
 0x139   : > { %1403 = vmatprep.mubr.f32.mxu0 %v3431_v34 }
 0x13a   : > { %1639 = vmatmul.mubr.f32.gmra.mrb[96].mxu1 %v3427_v30 }
 0x13b   : > { %1643 = vmatprep.mubr.f32.mxu1 %v3431_v34 }
 0x13c   : > { %1404 = vmatmul.mubr.f32.gmra.mrb[98].mxu0 %v3437_v32 }
 0x13d   : > { %1409 = vmatprep.mubr.f32.mxu0 %v3441_v36 }
 0x13e   : > { %1644 = vmatmul.mubr.f32.gmra.mrb[98].mxu1 %v3437_v32 }
 0x13f   : > { %1648 = vmatprep.mubr.f32.mxu1 %v3441_v36 }
 0x140   : > { %1410 = vmatmul.mubr.f32.gmra.mrb[100].mxu0 %v3447_v38 }
 0x141   : > { %1415 = vmatprep.mubr.f32.mxu0 %v3451_v39 }
 0x142   : > { %1649 = vmatmul.mubr.f32.gmra.mrb[100].mxu1 %v3447_v38 }
 0x143   : > { %1653 = vmatprep.mubr.f32.mxu1 %v3451_v39 }
 0x144   : > { %1416 = vmatmul.mubr.f32.gmra.mrb[102].mxu0 %v3457_v40 }
 0x145   : > { %1421 = vmatprep.mubr.f32.mxu0 %v3461_v41 }
 0x146   : > { %1654 = vmatmul.mubr.f32.gmra.mrb[102].mxu1 %v3457_v40 }
 0x147   : > { %1658 = vmatprep.mubr.f32.mxu1 %v3461_v41 }
 0x148   : > { %1422 = vmatmul.mubr.f32.gmra.mrb[104].mxu0 %v3467_v43 }
 0x149   : > { %1427 = vmatprep.mubr.f32.mxu0 %v3471_v45 }
 0x14a   : > { %1659 = vmatmul.mubr.f32.gmra.mrb[104].mxu1 %v3467_v43 }
 0x14b   : > { %1663 = vmatprep.mubr.f32.mxu1 %v3471_v45  ;;  %v789_v24 = vpop.f32.mrb[0].mxu0 }
 0x14c   : > { %1719 = vst [vmem:[%s3669_s9] sm:$0xff] %v789_v24  ;;  %v791_v29 = vpop.f32.mrb[1].mxu0  ;;  %1428 = vmatmul.mubr.f32.gmra.mrb[106].mxu0 %v3477_v47 }
 0x14d   : > { %v1046_v42 = vpop.f32.mrb[0].mxu1  ;;  %1720 = vst [vmem:[%s3669_s9 + $0x8] sm:$0xff] %v791_v29  ;;  %1433 = vmatprep.mubr.f32.mxu0 %v3481_v50 }
 0x14e   : > { %1721 = vst [vmem:[%s3669_s9 + $0x10] sm:$0xff] %v1046_v42  ;;  %v1048_v44 = vpop.f32.mrb[1].mxu1  ;;  %1664 = vmatmul.mubr.f32.gmra.mrb[106].mxu1 %v3477_v47 }
 0x14f   : > { %1722 = vst [vmem:[%s3669_s9 + $0x18] sm:$0xff] %v1048_v44  ;;  %1668 = vmatprep.mubr.f32.mxu1 %v3481_v50  ;;  %v795_v59 = vpop.f32.mrb[2].mxu0 }
 0x150   : > { %1727 = vst [vmem:[%s3669_s9 + $0x38] sm:$0xff] %v795_v59  ;;  %v797_v62 = vpop.f32.mrb[3].mxu0  ;;  %1434 = vmatmul.mubr.f32.gmra.mrb[108].mxu0 %v3487_v52 }
 0x151   : > { %v1052_v12 = vpop.f32.mrb[2].mxu1  ;;  %1728 = vst [vmem:[%s3669_s9 + $0x40] sm:$0xff] %v797_v62  ;;  %1439 = vmatprep.mubr.f32.mxu0 %v3491_v55 }
 0x152   : > { %1729 = vst [vmem:[%s3669_s9 + $0x48] sm:$0xff] %v1052_v12  ;;  %v1054_v14 = vpop.f32.mrb[3].mxu1  ;;  %1669 = vmatmul.mubr.f32.gmra.mrb[108].mxu1 %v3487_v52 }
 0x153   : > { %1730 = vst [vmem:[%s3669_s9 + $0x50] sm:$0xff] %v1054_v14  ;;  %1673 = vmatprep.mubr.f32.mxu1 %v3491_v55  ;;  %v801_v31 = vpop.f32.mrb[4].mxu0 }
 0x154   : > { %1734 = vst [vmem:[%s3669_s9 + $0x70] sm:$0xff] %v801_v31  ;;  %v803_v35 = vpop.f32.mrb[5].mxu0  ;;  %1440 = vmatmul.mubr.f32.gmra.mrb[110].mxu0 %v3497_v56 }
 0x155   : > { %v1058_v51 = vpop.f32.mrb[4].mxu1  ;;  %1735 = vst [vmem:[%s3669_s9 + $0x78] sm:$0xff] %v803_v35  ;;  %1445 = vmatprep.mubr.f32.mxu0 %v3501_v58 }
 0x156   : > { %1736 = vst [vmem:[%s3669_s9 + $0x80] sm:$0xff] %v1058_v51  ;;  %v1060_v53 = vpop.f32.mrb[5].mxu1  ;;  %1674 = vmatmul.mubr.f32.gmra.mrb[110].mxu1 %v3497_v56 }
 0x157   : > { %1737 = vst [vmem:[%s3669_s9 + $0x88] sm:$0xff] %v1060_v53  ;;  %1678 = vmatprep.mubr.f32.mxu1 %v3501_v58  ;;  %v807_v6 = vpop.f32.mrb[6].mxu0 }
 0x158   : > { %1741 = vst [vmem:[%s3669_s9 + $0xa8] sm:$0xff] %v807_v6  ;;  %v809_v9 = vpop.f32.mrb[7].mxu0  ;;  %1446 = vmatmul.mubr.f32.gmra.mrb[112].mxu0 %v3507_v61 }
 0x159   : > { %v1064_v26 = vpop.f32.mrb[6].mxu1  ;;  %1742 = vst [vmem:[%s3669_s9 + $0xb0] sm:$0xff] %v809_v9  ;;  %1451 = vmatprep.mubr.f32.mxu0 %v3511_v63 }
 0x15a   : > { %1743 = vst [vmem:[%s3669_s9 + $0xb8] sm:$0xff] %v1064_v26  ;;  %v1066_v28 = vpop.f32.mrb[7].mxu1  ;;  %1679 = vmatmul.mubr.f32.gmra.mrb[112].mxu1 %v3507_v61 }
 0x15b   : > { %1744 = vst [vmem:[%s3669_s9 + $0xc0] sm:$0xff] %v1066_v28  ;;  %1683 = vmatprep.mubr.f32.mxu1 %v3511_v63  ;;  %v813_v49 = vpop.f32.mrb[8].mxu0 }
 0x15c   : > { %1748 = vst [vmem:[%s3669_s9 + $0xe0] sm:$0xff] %v813_v49  ;;  %v815_v54 = vpop.f32.mrb[9].mxu0  ;;  %1452 = vmatmul.mubr.f32.gmra.mrb[114].mxu0 %v3517_v0 }
 0x15d   : > { %v1070_v7 = vpop.f32.mrb[8].mxu1  ;;  %1749 = vst [vmem:[%s3669_s9 + $0xe8] sm:$0xff] %v815_v54  ;;  %1457 = vmatprep.mubr.f32.mxu0 %v3521_v1 }
 0x15e   : > { %1750 = vst [vmem:[%s3669_s9 + $0xf0] sm:$0xff] %v1070_v7  ;;  %v1072_v10 = vpop.f32.mrb[9].mxu1  ;;  %1684 = vmatmul.mubr.f32.gmra.mrb[114].mxu1 %v3517_v0 }
 0x15f   : > { %1751 = vst [vmem:[%s3669_s9 + $0xf8] sm:$0xff] %v1072_v10  ;;  %1688 = vmatprep.mubr.f32.mxu1 %v3521_v1  ;;  %v819_v33 = vpop.f32.mrb[10].mxu0 }
 0x160   : > { %1755 = vst [vmem:[%s3669_s9 + $0x118] sm:$0xff] %v819_v33  ;;  %v821_v37 = vpop.f32.mrb[11].mxu0  ;;  %1458 = vmatmul.mubr.f32.gmra.mrb[116].mxu0 %v3527_v2 }
 0x161   : > { %v1076_v57 = vpop.f32.mrb[10].mxu1  ;;  %1756 = vst [vmem:[%s3669_s9 + $0x120] sm:$0xff] %v821_v37  ;;  %1463 = vmatprep.mubr.f32.mxu0 %v3531_v3 }
 0x162   : > { %1757 = vst [vmem:[%s3669_s9 + $0x128] sm:$0xff] %v1076_v57  ;;  %v1078_v60 = vpop.f32.mrb[11].mxu1  ;;  %1689 = vmatmul.mubr.f32.gmra.mrb[116].mxu1 %v3527_v2 }
 0x163   : > { %1758 = vst [vmem:[%s3669_s9 + $0x130] sm:$0xff] %v1078_v60  ;;  %1693 = vmatprep.mubr.f32.mxu1 %v3531_v3  ;;  %v825_v18 = vpop.f32.mrb[12].mxu0 }
 0x164   : > { %1762 = vst [vmem:[%s3669_s9 + $0x150] sm:$0xff] %v825_v18  ;;  %v827_v21 = vpop.f32.mrb[13].mxu0  ;;  %1464 = vmatmul.mubr.f32.gmra.mrb[118].mxu0 %v3537_v4 }
 0x165   : > { %v1082_v46 = vpop.f32.mrb[12].mxu1  ;;  %1763 = vst [vmem:[%s3669_s9 + $0x158] sm:$0xff] %v827_v21  ;;  %1469 = vmatprep.mubr.f32.mxu0 %v3541_v11 }
 0x166   : > { %1764 = vst [vmem:[%s3669_s9 + $0x160] sm:$0xff] %v1082_v46  ;;  %v1084_v48 = vpop.f32.mrb[13].mxu1  ;;  %1694 = vmatmul.mubr.f32.gmra.mrb[118].mxu1 %v3537_v4 }
 0x167   : > { %1765 = vst [vmem:[%s3669_s9 + $0x168] sm:$0xff] %v1084_v48  ;;  %1698 = vmatprep.mubr.f32.mxu1 %v3541_v11  ;;  %v831_v5 = vpop.f32.mrb[14].mxu0 }
 0x168   : > { %1769 = vst [vmem:[%s3669_s9 + $0x188] sm:$0xff] %v831_v5  ;;  %v833_v8 = vpop.f32.mrb[15].mxu0  ;;  %1470 = vmatmul.mubr.f32.gmra.mrb[120].mxu0 %v3547_v13 }
 0x169   : > { %v1088_v22 = vpop.f32.mrb[14].mxu1  ;;  %1770 = vst [vmem:[%s3669_s9 + $0x190] sm:$0xff] %v833_v8  ;;  %1475 = vmatprep.mubr.f32.mxu0 %v3551_v15 }
 0x16a   : > { %1771 = vst [vmem:[%s3669_s9 + $0x198] sm:$0xff] %v1088_v22  ;;  %v1090_v23 = vpop.f32.mrb[15].mxu1  ;;  %1699 = vmatmul.mubr.f32.gmra.mrb[120].mxu1 %v3547_v13 }
 0x16b   : > { %1772 = vst [vmem:[%s3669_s9 + $0x1a0] sm:$0xff] %v1090_v23  ;;  %1703 = vmatprep.mubr.f32.mxu1 %v3551_v15  ;;  %v837_v30 = vpop.f32.mrb[16].mxu0 }
 0x16c   : > { %1776 = vst [vmem:[%s3669_s9 + $0x1c0] sm:$0xff] %v837_v30  ;;  %v839_v34 = vpop.f32.mrb[17].mxu0  ;;  %1476 = vmatmul.mubr.f32.gmra.mrb[122].mxu0 %v3557_v16 }
 0x16d   : > { %v1094_v32 = vpop.f32.mrb[16].mxu1  ;;  %1777 = vst [vmem:[%s3669_s9 + $0x1c8] sm:$0xff] %v839_v34  ;;  %1481 = vmatprep.mubr.f32.mxu0 %v3561_v17 }
 0x16e   : > { %1778 = vst [vmem:[%s3669_s9 + $0x1d0] sm:$0xff] %v1094_v32  ;;  %v1096_v36 = vpop.f32.mrb[17].mxu1  ;;  %1704 = vmatmul.mubr.f32.gmra.mrb[122].mxu1 %v3557_v16 }
 0x16f   : > { %1779 = vst [vmem:[%s3669_s9 + $0x1d8] sm:$0xff] %v1096_v36  ;;  %1708 = vmatprep.mubr.f32.mxu1 %v3561_v17  ;;  %v843_v38 = vpop.f32.mrb[18].mxu0 }
 0x170   : > { %1783 = vst [vmem:[%s3669_s9 + $0x1f8] sm:$0xff] %v843_v38  ;;  %v845_v39 = vpop.f32.mrb[19].mxu0  ;;  %1482 = vmatmul.mubr.f32.gmra.mrb[124].mxu0 %v3567_v19 }
 0x171   : > { %v1100_v40 = vpop.f32.mrb[18].mxu1  ;;  %1784 = vst [vmem:[%s3669_s9 + $0x200] sm:$0xff] %v845_v39  ;;  %1487 = vmatprep.mubr.f32.mxu0 %v3571_v20 }
 0x172   : > { %1785 = vst [vmem:[%s3669_s9 + $0x208] sm:$0xff] %v1100_v40  ;;  %v1102_v41 = vpop.f32.mrb[19].mxu1  ;;  %1709 = vmatmul.mubr.f32.gmra.mrb[124].mxu1 %v3567_v19 }
 0x173   : > { %1786 = vst [vmem:[%s3669_s9 + $0x210] sm:$0xff] %v1102_v41  ;;  %1713 = vmatprep.mubr.f32.mxu1 %v3571_v20  ;;  %v849_v43 = vpop.f32.mrb[20].mxu0 }
 0x174   : > { %1790 = vst [vmem:[%s3669_s9 + $0x230] sm:$0xff] %v849_v43  ;;  %v851_v45 = vpop.f32.mrb[21].mxu0  ;;  %1488 = vmatmul.mubr.f32.gmra.mrb[126].mxu0 %v3577_v25 }
 0x175   : > { %v1106_v47 = vpop.f32.mrb[20].mxu1  ;;  %1791 = vst [vmem:[%s3669_s9 + $0x238] sm:$0xff] %v851_v45 }
 0x176   : > { %1792 = vst [vmem:[%s3669_s9 + $0x240] sm:$0xff] %v1106_v47  ;;  %v1108_v50 = vpop.f32.mrb[21].mxu1  ;;  %1714 = vmatmul.mubr.f32.gmra.mrb[126].mxu1 %v3577_v25 }
 0x177   : > { %1793 = vst [vmem:[%s3669_s9 + $0x248] sm:$0xff] %v1108_v50  ;;  %v855_v52 = vpop.f32.mrb[22].mxu0 }
 0x178   : > { %1797 = vst [vmem:[%s3669_s9 + $0x268] sm:$0xff] %v855_v52  ;;  %v857_v55 = vpop.f32.mrb[23].mxu0 }
 0x179   : > { %v1112_v56 = vpop.f32.mrb[22].mxu1  ;;  %1798 = vst [vmem:[%s3669_s9 + $0x270] sm:$0xff] %v857_v55 }
 0x17a   : > { %1799 = vst [vmem:[%s3669_s9 + $0x278] sm:$0xff] %v1112_v56  ;;  %v1114_v58 = vpop.f32.mrb[23].mxu1 }
 0x17b   : > { %1800 = vst [vmem:[%s3669_s9 + $0x280] sm:$0xff] %v1114_v58  ;;  %v861_v61 = vpop.f32.mrb[24].mxu0 }
 0x17c   : > { %1804 = vst [vmem:[%s3669_s9 + $0x2a0] sm:$0xff] %v861_v61  ;;  %v863_v63 = vpop.f32.mrb[25].mxu0 }
 0x17d   : > { %v1118_v0 = vpop.f32.mrb[24].mxu1  ;;  %1805 = vst [vmem:[%s3669_s9 + $0x2a8] sm:$0xff] %v863_v63 }
 0x17e   : > { %1806 = vst [vmem:[%s3669_s9 + $0x2b0] sm:$0xff] %v1118_v0  ;;  %v1120_v1 = vpop.f32.mrb[25].mxu1 }
 0x17f   : > { %1807 = vst [vmem:[%s3669_s9 + $0x2b8] sm:$0xff] %v1120_v1  ;;  %v867_v2 = vpop.f32.mrb[26].mxu0 }
 0x180   : > { %1811 = vst [vmem:[%s3669_s9 + $0x2d8] sm:$0xff] %v867_v2  ;;  %v869_v3 = vpop.f32.mrb[27].mxu0 }
 0x181   : > { %v1124_v4 = vpop.f32.mrb[26].mxu1  ;;  %1812 = vst [vmem:[%s3669_s9 + $0x2e0] sm:$0xff] %v869_v3 }
 0x182   : > { %1813 = vst [vmem:[%s3669_s9 + $0x2e8] sm:$0xff] %v1124_v4  ;;  %v1126_v11 = vpop.f32.mrb[27].mxu1 }
 0x183   : > { %1814 = vst [vmem:[%s3669_s9 + $0x2f0] sm:$0xff] %v1126_v11  ;;  %v873_v13 = vpop.f32.mrb[28].mxu0 }
 0x184   : > { %1818 = vst [vmem:[%s3669_s9 + $0x310] sm:$0xff] %v873_v13  ;;  %v875_v15 = vpop.f32.mrb[29].mxu0 }
 0x185   : > { %v1130_v16 = vpop.f32.mrb[28].mxu1  ;;  %1819 = vst [vmem:[%s3669_s9 + $0x318] sm:$0xff] %v875_v15 }
 0x186   : > { %1820 = vst [vmem:[%s3669_s9 + $0x320] sm:$0xff] %v1130_v16  ;;  %v1132_v17 = vpop.f32.mrb[29].mxu1 }
 0x187   : > { %1821 = vst [vmem:[%s3669_s9 + $0x328] sm:$0xff] %v1132_v17  ;;  %v879_v19 = vpop.f32.mrb[30].mxu0 }
 0x188   : > { %1825 = vst [vmem:[%s3669_s9 + $0x348] sm:$0xff] %v879_v19  ;;  %v881_v20 = vpop.f32.mrb[31].mxu0 }
 0x189   : > { %v1136_v25 = vpop.f32.mrb[30].mxu1  ;;  %1826 = vst [vmem:[%s3669_s9 + $0x350] sm:$0xff] %v881_v20 }
 0x18a   : > { %1827 = vst [vmem:[%s3669_s9 + $0x358] sm:$0xff] %v1136_v25  ;;  %v1138_v27 = vpop.f32.mrb[31].mxu1 }
 0x18b   : > { %1828 = vst [vmem:[%s3669_s9 + $0x360] sm:$0xff] %v1138_v27  ;;  %v885_v24 = vpop.f32.mrb[32].mxu0 }
 0x18c   : > { %1832 = vst [vmem:[%s3669_s9 + $0x380] sm:$0xff] %v885_v24  ;;  %v887_v29 = vpop.f32.mrb[33].mxu0 }
 0x18d   : > { %v1142_v42 = vpop.f32.mrb[32].mxu1  ;;  %1833 = vst [vmem:[%s3669_s9 + $0x388] sm:$0xff] %v887_v29 }
 0x18e   : > { %1834 = vst [vmem:[%s3669_s9 + $0x390] sm:$0xff] %v1142_v42  ;;  %v1144_v44 = vpop.f32.mrb[33].mxu1 }
 0x18f   : > { %1835 = vst [vmem:[%s3669_s9 + $0x398] sm:$0xff] %v1144_v44  ;;  %v891_v59 = vpop.f32.mrb[34].mxu0 }
 0x190   : > { %1839 = vst [vmem:[%s3669_s9 + $0x3b8] sm:$0xff] %v891_v59  ;;  %v893_v62 = vpop.f32.mrb[35].mxu0 }
 0x191   : > { %v1148_v12 = vpop.f32.mrb[34].mxu1  ;;  %1840 = vst [vmem:[%s3669_s9 + $0x3c0] sm:$0xff] %v893_v62 }
 0x192   : > { %1841 = vst [vmem:[%s3669_s9 + $0x3c8] sm:$0xff] %v1148_v12  ;;  %v1150_v14 = vpop.f32.mrb[35].mxu1 }
 0x193   : > { %1842 = vst [vmem:[%s3669_s9 + $0x3d0] sm:$0xff] %v1150_v14  ;;  %v897_v31 = vpop.f32.mrb[36].mxu0 }
 0x194   : > { %1846 = vst [vmem:[%s3669_s9 + $0x3f0] sm:$0xff] %v897_v31  ;;  %v899_v35 = vpop.f32.mrb[37].mxu0 }
 0x195   : > { %v1154_v51 = vpop.f32.mrb[36].mxu1  ;;  %1847 = vst [vmem:[%s3669_s9 + $0x3f8] sm:$0xff] %v899_v35 }
 0x196   : > { %1848 = vst [vmem:[%s3669_s9 + $0x400] sm:$0xff] %v1154_v51  ;;  %v1156_v53 = vpop.f32.mrb[37].mxu1 }
 0x197   : > { %1849 = vst [vmem:[%s3669_s9 + $0x408] sm:$0xff] %v1156_v53  ;;  %v903_v6 = vpop.f32.mrb[38].mxu0 }
 0x198   : > { %1853 = vst [vmem:[%s3669_s9 + $0x428] sm:$0xff] %v903_v6  ;;  %v905_v9 = vpop.f32.mrb[39].mxu0 }
 0x199   : > { %v1160_v26 = vpop.f32.mrb[38].mxu1  ;;  %1854 = vst [vmem:[%s3669_s9 + $0x430] sm:$0xff] %v905_v9 }
 0x19a   : > { %1855 = vst [vmem:[%s3669_s9 + $0x438] sm:$0xff] %v1160_v26  ;;  %v1162_v28 = vpop.f32.mrb[39].mxu1 }
 0x19b   : > { %1856 = vst [vmem:[%s3669_s9 + $0x440] sm:$0xff] %v1162_v28  ;;  %v909_v49 = vpop.f32.mrb[40].mxu0 }
 0x19c   : > { %1860 = vst [vmem:[%s3669_s9 + $0x460] sm:$0xff] %v909_v49  ;;  %v911_v54 = vpop.f32.mrb[41].mxu0 }
 0x19d   : > { %v1166_v7 = vpop.f32.mrb[40].mxu1  ;;  %1861 = vst [vmem:[%s3669_s9 + $0x468] sm:$0xff] %v911_v54 }
 0x19e   : > { %1862 = vst [vmem:[%s3669_s9 + $0x470] sm:$0xff] %v1166_v7  ;;  %v1168_v10 = vpop.f32.mrb[41].mxu1 }
 0x19f   : > { %1863 = vst [vmem:[%s3669_s9 + $0x478] sm:$0xff] %v1168_v10  ;;  %v915_v33 = vpop.f32.mrb[42].mxu0 }
 0x1a0   : > { %1867 = vst [vmem:[%s3669_s9 + $0x498] sm:$0xff] %v915_v33  ;;  %v917_v37 = vpop.f32.mrb[43].mxu0 }
 0x1a1   : > { %v1172_v57 = vpop.f32.mrb[42].mxu1  ;;  %1868 = vst [vmem:[%s3669_s9 + $0x4a0] sm:$0xff] %v917_v37 }
 0x1a2   : > { %1869 = vst [vmem:[%s3669_s9 + $0x4a8] sm:$0xff] %v1172_v57  ;;  %v1174_v60 = vpop.f32.mrb[43].mxu1 }
 0x1a3   : > { %1870 = vst [vmem:[%s3669_s9 + $0x4b0] sm:$0xff] %v1174_v60  ;;  %v921_v18 = vpop.f32.mrb[44].mxu0 }
 0x1a4   : > { %1874 = vst [vmem:[%s3669_s9 + $0x4d0] sm:$0xff] %v921_v18  ;;  %v923_v21 = vpop.f32.mrb[45].mxu0 }
 0x1a5   : > { %v1178_v46 = vpop.f32.mrb[44].mxu1  ;;  %1875 = vst [vmem:[%s3669_s9 + $0x4d8] sm:$0xff] %v923_v21 }
 0x1a6   : > { %1876 = vst [vmem:[%s3669_s9 + $0x4e0] sm:$0xff] %v1178_v46  ;;  %v1180_v48 = vpop.f32.mrb[45].mxu1 }
 0x1a7   : > { %1877 = vst [vmem:[%s3669_s9 + $0x4e8] sm:$0xff] %v1180_v48  ;;  %v927_v5 = vpop.f32.mrb[46].mxu0 }
 0x1a8   : > { %1881 = vst [vmem:[%s3669_s9 + $0x508] sm:$0xff] %v927_v5  ;;  %v929_v8 = vpop.f32.mrb[47].mxu0 }
 0x1a9   : > { %v1184_v22 = vpop.f32.mrb[46].mxu1  ;;  %1882 = vst [vmem:[%s3669_s9 + $0x510] sm:$0xff] %v929_v8 }
 0x1aa   : > { %1883 = vst [vmem:[%s3669_s9 + $0x518] sm:$0xff] %v1184_v22  ;;  %v1186_v23 = vpop.f32.mrb[47].mxu1 }
 0x1ab   : > { %1884 = vst [vmem:[%s3669_s9 + $0x520] sm:$0xff] %v1186_v23  ;;  %v933_v30 = vpop.f32.mrb[48].mxu0 }
 0x1ac   : > { %1888 = vst [vmem:[%s3669_s9 + $0x540] sm:$0xff] %v933_v30  ;;  %v935_v34 = vpop.f32.mrb[49].mxu0 }
 0x1ad   : > { %v1190_v32 = vpop.f32.mrb[48].mxu1  ;;  %1889 = vst [vmem:[%s3669_s9 + $0x548] sm:$0xff] %v935_v34 }
 0x1ae   : > { %1890 = vst [vmem:[%s3669_s9 + $0x550] sm:$0xff] %v1190_v32  ;;  %v1192_v36 = vpop.f32.mrb[49].mxu1 }
 0x1af   : > { %1891 = vst [vmem:[%s3669_s9 + $0x558] sm:$0xff] %v1192_v36  ;;  %v939_v38 = vpop.f32.mrb[50].mxu0 }
 0x1b0   : > { %1895 = vst [vmem:[%s3669_s9 + $0x578] sm:$0xff] %v939_v38  ;;  %v941_v39 = vpop.f32.mrb[51].mxu0 }
 0x1b1   : > { %v1196_v40 = vpop.f32.mrb[50].mxu1  ;;  %1896 = vst [vmem:[%s3669_s9 + $0x580] sm:$0xff] %v941_v39 }
 0x1b2   : > { %1897 = vst [vmem:[%s3669_s9 + $0x588] sm:$0xff] %v1196_v40  ;;  %v1198_v41 = vpop.f32.mrb[51].mxu1 }
 0x1b3   : > { %1898 = vst [vmem:[%s3669_s9 + $0x590] sm:$0xff] %v1198_v41  ;;  %v945_v43 = vpop.f32.mrb[52].mxu0 }
 0x1b4   : > { %1902 = vst [vmem:[%s3669_s9 + $0x5b0] sm:$0xff] %v945_v43  ;;  %v947_v45 = vpop.f32.mrb[53].mxu0 }
 0x1b5   : > { %v1202_v47 = vpop.f32.mrb[52].mxu1  ;;  %1903 = vst [vmem:[%s3669_s9 + $0x5b8] sm:$0xff] %v947_v45 }
 0x1b6   : > { %1904 = vst [vmem:[%s3669_s9 + $0x5c0] sm:$0xff] %v1202_v47  ;;  %v1204_v50 = vpop.f32.mrb[53].mxu1 }
 0x1b7   : > { %1905 = vst [vmem:[%s3669_s9 + $0x5c8] sm:$0xff] %v1204_v50  ;;  %v951_v52 = vpop.f32.mrb[54].mxu0 }
 0x1b8   : > { %1909 = vst [vmem:[%s3669_s9 + $0x5e8] sm:$0xff] %v951_v52  ;;  %v953_v55 = vpop.f32.mrb[55].mxu0 }
 0x1b9   : > { %v1208_v56 = vpop.f32.mrb[54].mxu1  ;;  %1910 = vst [vmem:[%s3669_s9 + $0x5f0] sm:$0xff] %v953_v55 }
 0x1ba   : > { %1911 = vst [vmem:[%s3669_s9 + $0x5f8] sm:$0xff] %v1208_v56  ;;  %v1210_v58 = vpop.f32.mrb[55].mxu1 }
 0x1bb   : > { %1912 = vst [vmem:[%s3669_s9 + $0x600] sm:$0xff] %v1210_v58  ;;  %v957_v61 = vpop.f32.mrb[56].mxu0 }
 0x1bc   : > { %1916 = vst [vmem:[%s3669_s9 + $0x620] sm:$0xff] %v957_v61  ;;  %v959_v63 = vpop.f32.mrb[57].mxu0 }
 0x1bd   : > { %v1214_v0 = vpop.f32.mrb[56].mxu1  ;;  %1917 = vst [vmem:[%s3669_s9 + $0x628] sm:$0xff] %v959_v63 }
 0x1be   : > { %1918 = vst [vmem:[%s3669_s9 + $0x630] sm:$0xff] %v1214_v0  ;;  %v1216_v1 = vpop.f32.mrb[57].mxu1 }
 0x1bf   : > { %1919 = vst [vmem:[%s3669_s9 + $0x638] sm:$0xff] %v1216_v1  ;;  %v963_v2 = vpop.f32.mrb[58].mxu0 }
 0x1c0   : > { %1923 = vst [vmem:[%s3669_s9 + $0x658] sm:$0xff] %v963_v2  ;;  %v965_v3 = vpop.f32.mrb[59].mxu0 }
 0x1c1   : > { %v1220_v4 = vpop.f32.mrb[58].mxu1  ;;  %1924 = vst [vmem:[%s3669_s9 + $0x660] sm:$0xff] %v965_v3 }
 0x1c2   : > { %1925 = vst [vmem:[%s3669_s9 + $0x668] sm:$0xff] %v1220_v4  ;;  %v1222_v11 = vpop.f32.mrb[59].mxu1 }
 0x1c3   : > { %1926 = vst [vmem:[%s3669_s9 + $0x670] sm:$0xff] %v1222_v11  ;;  %v969_v13 = vpop.f32.mrb[60].mxu0 }
 0x1c4   : > { %1930 = vst [vmem:[%s3669_s9 + $0x690] sm:$0xff] %v969_v13  ;;  %v971_v15 = vpop.f32.mrb[61].mxu0 }
 0x1c5   : > { %v1226_v16 = vpop.f32.mrb[60].mxu1  ;;  %1931 = vst [vmem:[%s3669_s9 + $0x698] sm:$0xff] %v971_v15 }
 0x1c6   : > { %1932 = vst [vmem:[%s3669_s9 + $0x6a0] sm:$0xff] %v1226_v16  ;;  %v1228_v17 = vpop.f32.mrb[61].mxu1 }
 0x1c7   : > { %1933 = vst [vmem:[%s3669_s9 + $0x6a8] sm:$0xff] %v1228_v17  ;;  %v975_v19 = vpop.f32.mrb[62].mxu0 }
 0x1c8   : > { %1937 = vst [vmem:[%s3669_s9 + $0x6c8] sm:$0xff] %v975_v19  ;;  %v977_v20 = vpop.f32.mrb[63].mxu0 }
 0x1c9   : > { %v1232_v25 = vpop.f32.mrb[62].mxu1  ;;  %1938 = vst [vmem:[%s3669_s9 + $0x6d0] sm:$0xff] %v977_v20 }
 0x1ca   : > { %1939 = vst [vmem:[%s3669_s9 + $0x6d8] sm:$0xff] %v1232_v25  ;;  %v1234_v27 = vpop.f32.mrb[63].mxu1 }
 0x1cb   : > { %1940 = vst [vmem:[%s3669_s9 + $0x6e0] sm:$0xff] %v1234_v27  ;;  %v1303_v24 = vpop.f32.mrb[64].mxu0 }
 0x1cc   : > { %1723 = vst [vmem:[%s3669_s9 + $0x20] sm:$0xff] %v1303_v24  ;;  %v1305_v29 = vpop.f32.mrb[65].mxu0 }
 0x1cd   : > { %v1560_v42 = vpop.f32.mrb[64].mxu1  ;;  %1724 = vst [vmem:[%s3669_s9 + $0x28] sm:$0xff] %v1305_v29 }
 0x1ce   : > { %1726 = vst.msk [vmem:[%s3669_s9 + $0x30] sm:$0xff] %vm1725_vm0, %v1560_v42  ;;  %v1562_v44 = vpop.f32.mrb[65].mxu1 }
 0x1cf   : > { %v1309_v59 = vpop.f32.mrb[66].mxu0 }
 0x1d0   : > { %1731 = vst [vmem:[%s3669_s9 + $0x58] sm:$0xff] %v1309_v59  ;;  %v1311_v62 = vpop.f32.mrb[67].mxu0 }
 0x1d1   : > { %v1565_v12 = vpop.f32.mrb[66].mxu1  ;;  %1732 = vst [vmem:[%s3669_s9 + $0x60] sm:$0xff] %v1311_v62 }
 0x1d2   : > { %1733 = vst.msk [vmem:[%s3669_s9 + $0x68] sm:$0xff] %vm1725_vm0, %v1565_v12  ;;  %v1567_v14 = vpop.f32.mrb[67].mxu1 }
 0x1d3   : > { %v1315_v31 = vpop.f32.mrb[68].mxu0 }
 0x1d4   : > { %1738 = vst [vmem:[%s3669_s9 + $0x90] sm:$0xff] %v1315_v31  ;;  %v1317_v35 = vpop.f32.mrb[69].mxu0 }
 0x1d5   : > { %v1570_v51 = vpop.f32.mrb[68].mxu1  ;;  %1739 = vst [vmem:[%s3669_s9 + $0x98] sm:$0xff] %v1317_v35 }
 0x1d6   : > { %1740 = vst.msk [vmem:[%s3669_s9 + $0xa0] sm:$0xff] %vm1725_vm0, %v1570_v51  ;;  %v1572_v53 = vpop.f32.mrb[69].mxu1 }
 0x1d7   : > { %v1321_v6 = vpop.f32.mrb[70].mxu0 }
 0x1d8   : > { %1745 = vst [vmem:[%s3669_s9 + $0xc8] sm:$0xff] %v1321_v6  ;;  %v1323_v9 = vpop.f32.mrb[71].mxu0 }
 0x1d9   : > { %v1575_v26 = vpop.f32.mrb[70].mxu1  ;;  %1746 = vst [vmem:[%s3669_s9 + $0xd0] sm:$0xff] %v1323_v9 }
 0x1da   : > { %1747 = vst.msk [vmem:[%s3669_s9 + $0xd8] sm:$0xff] %vm1725_vm0, %v1575_v26  ;;  %v1577_v28 = vpop.f32.mrb[71].mxu1 }
 0x1db   : > { %v1327_v49 = vpop.f32.mrb[72].mxu0 }
 0x1dc   : > { %1752 = vst [vmem:[%s3669_s9 + $0x100] sm:$0xff] %v1327_v49  ;;  %v1329_v54 = vpop.f32.mrb[73].mxu0 }
 0x1dd   : > { %v1580_v7 = vpop.f32.mrb[72].mxu1  ;;  %1753 = vst [vmem:[%s3669_s9 + $0x108] sm:$0xff] %v1329_v54 }
 0x1de   : > { %1754 = vst.msk [vmem:[%s3669_s9 + $0x110] sm:$0xff] %vm1725_vm0, %v1580_v7  ;;  %v1582_v10 = vpop.f32.mrb[73].mxu1 }
 0x1df   : > { %v1333_v33 = vpop.f32.mrb[74].mxu0 }
 0x1e0   : > { %1759 = vst [vmem:[%s3669_s9 + $0x138] sm:$0xff] %v1333_v33  ;;  %v1335_v37 = vpop.f32.mrb[75].mxu0 }
 0x1e1   : > { %v1585_v57 = vpop.f32.mrb[74].mxu1  ;;  %1760 = vst [vmem:[%s3669_s9 + $0x140] sm:$0xff] %v1335_v37 }
 0x1e2   : > { %1761 = vst.msk [vmem:[%s3669_s9 + $0x148] sm:$0xff] %vm1725_vm0, %v1585_v57  ;;  %v1587_v60 = vpop.f32.mrb[75].mxu1 }
 0x1e3   : > { %v1339_v18 = vpop.f32.mrb[76].mxu0 }
 0x1e4   : > { %1766 = vst [vmem:[%s3669_s9 + $0x170] sm:$0xff] %v1339_v18  ;;  %v1341_v21 = vpop.f32.mrb[77].mxu0 }
 0x1e5   : > { %v1590_v46 = vpop.f32.mrb[76].mxu1  ;;  %1767 = vst [vmem:[%s3669_s9 + $0x178] sm:$0xff] %v1341_v21 }
 0x1e6   : > { %1768 = vst.msk [vmem:[%s3669_s9 + $0x180] sm:$0xff] %vm1725_vm0, %v1590_v46  ;;  %v1592_v48 = vpop.f32.mrb[77].mxu1 }
 0x1e7   : > { %v1345_v5 = vpop.f32.mrb[78].mxu0 }
 0x1e8   : > { %1773 = vst [vmem:[%s3669_s9 + $0x1a8] sm:$0xff] %v1345_v5  ;;  %v1347_v8 = vpop.f32.mrb[79].mxu0 }
 0x1e9   : > { %v1595_v22 = vpop.f32.mrb[78].mxu1  ;;  %1774 = vst [vmem:[%s3669_s9 + $0x1b0] sm:$0xff] %v1347_v8 }
 0x1ea   : > { %1775 = vst.msk [vmem:[%s3669_s9 + $0x1b8] sm:$0xff] %vm1725_vm0, %v1595_v22  ;;  %v1597_v23 = vpop.f32.mrb[79].mxu1 }
 0x1eb   : > { %v1351_v30 = vpop.f32.mrb[80].mxu0 }
 0x1ec   : > { %1780 = vst [vmem:[%s3669_s9 + $0x1e0] sm:$0xff] %v1351_v30  ;;  %v1353_v34 = vpop.f32.mrb[81].mxu0 }
 0x1ed   : > { %v1600_v32 = vpop.f32.mrb[80].mxu1  ;;  %1781 = vst [vmem:[%s3669_s9 + $0x1e8] sm:$0xff] %v1353_v34 }
 0x1ee   : > { %1782 = vst.msk [vmem:[%s3669_s9 + $0x1f0] sm:$0xff] %vm1725_vm0, %v1600_v32  ;;  %v1602_v36 = vpop.f32.mrb[81].mxu1 }
 0x1ef   : > { %v1357_v38 = vpop.f32.mrb[82].mxu0 }
 0x1f0   : > { %1787 = vst [vmem:[%s3669_s9 + $0x218] sm:$0xff] %v1357_v38  ;;  %v1359_v39 = vpop.f32.mrb[83].mxu0 }
 0x1f1   : > { %v1605_v40 = vpop.f32.mrb[82].mxu1  ;;  %1788 = vst [vmem:[%s3669_s9 + $0x220] sm:$0xff] %v1359_v39 }
 0x1f2   : > { %1789 = vst.msk [vmem:[%s3669_s9 + $0x228] sm:$0xff] %vm1725_vm0, %v1605_v40  ;;  %v1607_v41 = vpop.f32.mrb[83].mxu1 }
 0x1f3   : > { %v1363_v43 = vpop.f32.mrb[84].mxu0 }
 0x1f4   : > { %1794 = vst [vmem:[%s3669_s9 + $0x250] sm:$0xff] %v1363_v43  ;;  %v1365_v45 = vpop.f32.mrb[85].mxu0 }
 0x1f5   : > { %v1610_v47 = vpop.f32.mrb[84].mxu1  ;;  %1795 = vst [vmem:[%s3669_s9 + $0x258] sm:$0xff] %v1365_v45 }
 0x1f6   : > { %1796 = vst.msk [vmem:[%s3669_s9 + $0x260] sm:$0xff] %vm1725_vm0, %v1610_v47  ;;  %v1612_v50 = vpop.f32.mrb[85].mxu1 }
 0x1f7   : > { %v1369_v52 = vpop.f32.mrb[86].mxu0 }
 0x1f8   : > { %1801 = vst [vmem:[%s3669_s9 + $0x288] sm:$0xff] %v1369_v52  ;;  %v1371_v55 = vpop.f32.mrb[87].mxu0 }
 0x1f9   : > { %v1615_v56 = vpop.f32.mrb[86].mxu1  ;;  %1802 = vst [vmem:[%s3669_s9 + $0x290] sm:$0xff] %v1371_v55 }
 0x1fa   : > { %1803 = vst.msk [vmem:[%s3669_s9 + $0x298] sm:$0xff] %vm1725_vm0, %v1615_v56  ;;  %v1617_v58 = vpop.f32.mrb[87].mxu1 }
 0x1fb   : > { %v1375_v61 = vpop.f32.mrb[88].mxu0 }
 0x1fc   : > { %1808 = vst [vmem:[%s3669_s9 + $0x2c0] sm:$0xff] %v1375_v61  ;;  %v1377_v63 = vpop.f32.mrb[89].mxu0 }
 0x1fd   : > { %v1620_v0 = vpop.f32.mrb[88].mxu1  ;;  %1809 = vst [vmem:[%s3669_s9 + $0x2c8] sm:$0xff] %v1377_v63 }
 0x1fe   : > { %1810 = vst.msk [vmem:[%s3669_s9 + $0x2d0] sm:$0xff] %vm1725_vm0, %v1620_v0  ;;  %v1622_v1 = vpop.f32.mrb[89].mxu1 }
 0x1ff   : > { %v1381_v2 = vpop.f32.mrb[90].mxu0 }
 0x200   : > { %1815 = vst [vmem:[%s3669_s9 + $0x2f8] sm:$0xff] %v1381_v2  ;;  %v1383_v3 = vpop.f32.mrb[91].mxu0 }
 0x201   : > { %v1625_v4 = vpop.f32.mrb[90].mxu1  ;;  %1816 = vst [vmem:[%s3669_s9 + $0x300] sm:$0xff] %v1383_v3 }
 0x202   : > { %1817 = vst.msk [vmem:[%s3669_s9 + $0x308] sm:$0xff] %vm1725_vm0, %v1625_v4  ;;  %v1627_v11 = vpop.f32.mrb[91].mxu1 }
 0x203   : > { %v1387_v13 = vpop.f32.mrb[92].mxu0 }
 0x204   : > { %1822 = vst [vmem:[%s3669_s9 + $0x330] sm:$0xff] %v1387_v13  ;;  %v1389_v15 = vpop.f32.mrb[93].mxu0 }
 0x205   : > { %v1630_v16 = vpop.f32.mrb[92].mxu1  ;;  %1823 = vst [vmem:[%s3669_s9 + $0x338] sm:$0xff] %v1389_v15 }
 0x206   : > { %1824 = vst.msk [vmem:[%s3669_s9 + $0x340] sm:$0xff] %vm1725_vm0, %v1630_v16  ;;  %v1632_v17 = vpop.f32.mrb[93].mxu1 }
 0x207   : > { %v1393_v19 = vpop.f32.mrb[94].mxu0 }
 0x208   : > { %1829 = vst [vmem:[%s3669_s9 + $0x368] sm:$0xff] %v1393_v19  ;;  %v1395_v20 = vpop.f32.mrb[95].mxu0 }
 0x209   : > { %v1635_v25 = vpop.f32.mrb[94].mxu1  ;;  %1830 = vst [vmem:[%s3669_s9 + $0x370] sm:$0xff] %v1395_v20 }
 0x20a   : > { %1831 = vst.msk [vmem:[%s3669_s9 + $0x378] sm:$0xff] %vm1725_vm0, %v1635_v25  ;;  %v1637_v27 = vpop.f32.mrb[95].mxu1 }
 0x20b   : > { %v1399_v24 = vpop.f32.mrb[96].mxu0 }
 0x20c   : > { %1836 = vst [vmem:[%s3669_s9 + $0x3a0] sm:$0xff] %v1399_v24  ;;  %v1401_v29 = vpop.f32.mrb[97].mxu0 }
 0x20d   : > { %v1640_v42 = vpop.f32.mrb[96].mxu1  ;;  %1837 = vst [vmem:[%s3669_s9 + $0x3a8] sm:$0xff] %v1401_v29 }
 0x20e   : > { %1838 = vst.msk [vmem:[%s3669_s9 + $0x3b0] sm:$0xff] %vm1725_vm0, %v1640_v42  ;;  %v1642_v44 = vpop.f32.mrb[97].mxu1 }
 0x20f   : > { %v1405_v59 = vpop.f32.mrb[98].mxu0 }
 0x210   : > { %1843 = vst [vmem:[%s3669_s9 + $0x3d8] sm:$0xff] %v1405_v59  ;;  %v1407_v62 = vpop.f32.mrb[99].mxu0 }
 0x211   : > { %v1645_v12 = vpop.f32.mrb[98].mxu1  ;;  %1844 = vst [vmem:[%s3669_s9 + $0x3e0] sm:$0xff] %v1407_v62 }
 0x212   : > { %1845 = vst.msk [vmem:[%s3669_s9 + $0x3e8] sm:$0xff] %vm1725_vm0, %v1645_v12  ;;  %v1647_v14 = vpop.f32.mrb[99].mxu1 }
 0x213   : > { %v1411_v31 = vpop.f32.mrb[100].mxu0 }
 0x214   : > { %1850 = vst [vmem:[%s3669_s9 + $0x410] sm:$0xff] %v1411_v31  ;;  %v1413_v35 = vpop.f32.mrb[101].mxu0 }
 0x215   : > { %v1650_v51 = vpop.f32.mrb[100].mxu1  ;;  %1851 = vst [vmem:[%s3669_s9 + $0x418] sm:$0xff] %v1413_v35 }
 0x216   : > { %1852 = vst.msk [vmem:[%s3669_s9 + $0x420] sm:$0xff] %vm1725_vm0, %v1650_v51  ;;  %v1652_v53 = vpop.f32.mrb[101].mxu1 }
 0x217   : > { %v1417_v6 = vpop.f32.mrb[102].mxu0 }
 0x218   : > { %1857 = vst [vmem:[%s3669_s9 + $0x448] sm:$0xff] %v1417_v6  ;;  %v1419_v9 = vpop.f32.mrb[103].mxu0 }
 0x219   : > { %v1655_v26 = vpop.f32.mrb[102].mxu1  ;;  %1858 = vst [vmem:[%s3669_s9 + $0x450] sm:$0xff] %v1419_v9 }
 0x21a   : > { %1859 = vst.msk [vmem:[%s3669_s9 + $0x458] sm:$0xff] %vm1725_vm0, %v1655_v26  ;;  %v1657_v28 = vpop.f32.mrb[103].mxu1 }
 0x21b   : > { %v1423_v49 = vpop.f32.mrb[104].mxu0 }
 0x21c   : > { %1864 = vst [vmem:[%s3669_s9 + $0x480] sm:$0xff] %v1423_v49  ;;  %v1425_v54 = vpop.f32.mrb[105].mxu0 }
 0x21d   : > { %v1660_v7 = vpop.f32.mrb[104].mxu1  ;;  %1865 = vst [vmem:[%s3669_s9 + $0x488] sm:$0xff] %v1425_v54 }
 0x21e   : > { %1866 = vst.msk [vmem:[%s3669_s9 + $0x490] sm:$0xff] %vm1725_vm0, %v1660_v7  ;;  %v1662_v10 = vpop.f32.mrb[105].mxu1 }
 0x21f   : > { %v1429_v33 = vpop.f32.mrb[106].mxu0 }
 0x220   : > { %1871 = vst [vmem:[%s3669_s9 + $0x4b8] sm:$0xff] %v1429_v33  ;;  %v1431_v37 = vpop.f32.mrb[107].mxu0 }
 0x221   : > { %v1665_v57 = vpop.f32.mrb[106].mxu1  ;;  %1872 = vst [vmem:[%s3669_s9 + $0x4c0] sm:$0xff] %v1431_v37 }
 0x222   : > { %1873 = vst.msk [vmem:[%s3669_s9 + $0x4c8] sm:$0xff] %vm1725_vm0, %v1665_v57  ;;  %v1667_v60 = vpop.f32.mrb[107].mxu1 }
 0x223   : > { %v1435_v18 = vpop.f32.mrb[108].mxu0 }
 0x224   : > { %1878 = vst [vmem:[%s3669_s9 + $0x4f0] sm:$0xff] %v1435_v18  ;;  %v1437_v21 = vpop.f32.mrb[109].mxu0 }
 0x225   : > { %v1670_v46 = vpop.f32.mrb[108].mxu1  ;;  %1879 = vst [vmem:[%s3669_s9 + $0x4f8] sm:$0xff] %v1437_v21 }
 0x226   : > { %1880 = vst.msk [vmem:[%s3669_s9 + $0x500] sm:$0xff] %vm1725_vm0, %v1670_v46  ;;  %v1672_v48 = vpop.f32.mrb[109].mxu1 }
 0x227   : > { %v1441_v5 = vpop.f32.mrb[110].mxu0 }
 0x228   : > { %1885 = vst [vmem:[%s3669_s9 + $0x528] sm:$0xff] %v1441_v5  ;;  %v1443_v8 = vpop.f32.mrb[111].mxu0 }
 0x229   : > { %v1675_v22 = vpop.f32.mrb[110].mxu1  ;;  %1886 = vst [vmem:[%s3669_s9 + $0x530] sm:$0xff] %v1443_v8 }
 0x22a   : > { %1887 = vst.msk [vmem:[%s3669_s9 + $0x538] sm:$0xff] %vm1725_vm0, %v1675_v22  ;;  %v1677_v23 = vpop.f32.mrb[111].mxu1 }
 0x22b   : > { %v1447_v30 = vpop.f32.mrb[112].mxu0 }
 0x22c   : > { %1892 = vst [vmem:[%s3669_s9 + $0x560] sm:$0xff] %v1447_v30  ;;  %v1449_v34 = vpop.f32.mrb[113].mxu0 }
 0x22d   : > { %v1680_v32 = vpop.f32.mrb[112].mxu1  ;;  %1893 = vst [vmem:[%s3669_s9 + $0x568] sm:$0xff] %v1449_v34 }
 0x22e   : > { %1894 = vst.msk [vmem:[%s3669_s9 + $0x570] sm:$0xff] %vm1725_vm0, %v1680_v32  ;;  %v1682_v36 = vpop.f32.mrb[113].mxu1 }
 0x22f   : > { %v1453_v38 = vpop.f32.mrb[114].mxu0 }
 0x230   : > { %1899 = vst [vmem:[%s3669_s9 + $0x598] sm:$0xff] %v1453_v38  ;;  %v1455_v39 = vpop.f32.mrb[115].mxu0 }
 0x231   : > { %v1685_v40 = vpop.f32.mrb[114].mxu1  ;;  %1900 = vst [vmem:[%s3669_s9 + $0x5a0] sm:$0xff] %v1455_v39 }
 0x232   : > { %1901 = vst.msk [vmem:[%s3669_s9 + $0x5a8] sm:$0xff] %vm1725_vm0, %v1685_v40  ;;  %v1687_v41 = vpop.f32.mrb[115].mxu1 }
 0x233   : > { %v1459_v43 = vpop.f32.mrb[116].mxu0 }
 0x234   : > { %1906 = vst [vmem:[%s3669_s9 + $0x5d0] sm:$0xff] %v1459_v43  ;;  %v1461_v45 = vpop.f32.mrb[117].mxu0 }
 0x235   : > { %v1690_v47 = vpop.f32.mrb[116].mxu1  ;;  %1907 = vst [vmem:[%s3669_s9 + $0x5d8] sm:$0xff] %v1461_v45 }
 0x236   : > { %1908 = vst.msk [vmem:[%s3669_s9 + $0x5e0] sm:$0xff] %vm1725_vm0, %v1690_v47  ;;  %v1692_v50 = vpop.f32.mrb[117].mxu1 }
 0x237   : > { %v1465_v52 = vpop.f32.mrb[118].mxu0 }
 0x238   : > { %1913 = vst [vmem:[%s3669_s9 + $0x608] sm:$0xff] %v1465_v52  ;;  %v1467_v55 = vpop.f32.mrb[119].mxu0 }
 0x239   : > { %v1695_v56 = vpop.f32.mrb[118].mxu1  ;;  %1914 = vst [vmem:[%s3669_s9 + $0x610] sm:$0xff] %v1467_v55 }
 0x23a   : > { %1915 = vst.msk [vmem:[%s3669_s9 + $0x618] sm:$0xff] %vm1725_vm0, %v1695_v56  ;;  %v1697_v58 = vpop.f32.mrb[119].mxu1 }
 0x23b   : > { %v1471_v61 = vpop.f32.mrb[120].mxu0 }
 0x23c   : > { %1920 = vst [vmem:[%s3669_s9 + $0x640] sm:$0xff] %v1471_v61  ;;  %v1473_v63 = vpop.f32.mrb[121].mxu0 }
 0x23d   : > { %v1700_v0 = vpop.f32.mrb[120].mxu1  ;;  %1921 = vst [vmem:[%s3669_s9 + $0x648] sm:$0xff] %v1473_v63 }
 0x23e   : > { %1922 = vst.msk [vmem:[%s3669_s9 + $0x650] sm:$0xff] %vm1725_vm0, %v1700_v0  ;;  %v1702_v1 = vpop.f32.mrb[121].mxu1 }
 0x23f   : > { %v1477_v2 = vpop.f32.mrb[122].mxu0 }
 0x240   : > { %1927 = vst [vmem:[%s3669_s9 + $0x678] sm:$0xff] %v1477_v2  ;;  %v1479_v3 = vpop.f32.mrb[123].mxu0 }
 0x241   : > { %v1705_v4 = vpop.f32.mrb[122].mxu1  ;;  %1928 = vst [vmem:[%s3669_s9 + $0x680] sm:$0xff] %v1479_v3 }
 0x242   : > { %1929 = vst.msk [vmem:[%s3669_s9 + $0x688] sm:$0xff] %vm1725_vm0, %v1705_v4  ;;  %v1707_v11 = vpop.f32.mrb[123].mxu1 }
 0x243   : > { %v1483_v13 = vpop.f32.mrb[124].mxu0 }
 0x244   : > { %1934 = vst [vmem:[%s3669_s9 + $0x6b0] sm:$0xff] %v1483_v13  ;;  %v1485_v15 = vpop.f32.mrb[125].mxu0 }
 0x245   : > { %v1710_v16 = vpop.f32.mrb[124].mxu1  ;;  %1935 = vst [vmem:[%s3669_s9 + $0x6b8] sm:$0xff] %v1485_v15 }
 0x246   : > { %1936 = vst.msk [vmem:[%s3669_s9 + $0x6c0] sm:$0xff] %vm1725_vm0, %v1710_v16  ;;  %v1712_v17 = vpop.f32.mrb[125].mxu1 }
 0x247   : > { %v1489_v19 = vpop.f32.mrb[126].mxu0 }
 0x248   : > { %1941 = vst [vmem:[%s3669_s9 + $0x6e8] sm:$0xff] %v1489_v19  ;;  %v1491_v20 = vpop.f32.mrb[127].mxu0 }
 0x249   : > { %v1715_v25 = vpop.f32.mrb[126].mxu1  ;;  %1942 = vst [vmem:[%s3669_s9 + $0x6f0] sm:$0xff] %v1491_v20 }
 0x24a   : > { %1943 = vst.msk [vmem:[%s3669_s9 + $0x6f8] sm:$0xff] %vm1725_vm0, %v1715_v25  ;;  %v1717_v27 = vpop.f32.mrb[127].mxu1 }
 0x24b PF: > { %s15_s14 = sadd.s32 1, %s2454_s14   ;;  %s3995_s9 = smov %s2438_s10 }
 0x24c   : > { %p12_p9 = scmp.ge.s32.totalorder %s15_s14, 6   ;;  %s3996_s10 = smov %s2442_s11 }
 0x24d   : > { %s3997_s11 = smov %s2524_s21  ;;  %s3998_s12 = smov %s2450_s13 }
 0x24e   : > { %s3999_s13 = smov %s4001_s16  ;;  %14 = sbr.rel (!%p12_p9) target bundleno = 4 (0x4), region = 71 }
 0x255   :  { %1976 = vsyncpa [#allocation3], 1 }
 0x256   :  { %1978 = vsyncpa [#allocation3 + $0x1], 1 }

</bundles_post_ra>
